<compile_context>
chip_gen: v5e
topology: v5e:2x2
jax: 0.10.0
libtpu: 0.0.40
codegen_flags: <defaults>
</compile_context>

<pallas_src>
import math
import functools

import jax
import jax.numpy as jnp
from jax import lax
from jax.experimental import pallas as pl
from jax.experimental.pallas import tpu as pltpu


def _asga_kernel(xq_ref, xk_ref, xv_ref,
                 wq_ref, wk_ref, wv_ref, wo_ref,
                 wgq_ref, wgk_ref, wggq_ref, wggk_ref,
                 bq_ref, bk_ref, bv_ref, bo_ref,
                 bgq_ref, bgk_ref, bggq_ref, bggk_ref,
                 out_ref,
                 qg_s, kg_s, v_s,
                 *, h, d_k, block_q):
    """Grid = (batch, q_tile). Scratch holds gated Q/K and V for one batch."""
    qi = pl.program_id(1)
    cdt = qg_s.dtype
    scale = 1.0 / math.sqrt(d_k)

    # ---- once per batch: full-width QKV projections + self-gating ---------
    @pl.when(qi == 0)
    def _project_and_gate():
        xq = xq_ref[0]                                   # (L, d_model)
        xk = xk_ref[0]
        xv = xv_ref[0]
        q = jnp.dot(xq, wq_ref[...], preferred_element_type=jnp.float32) + bq_ref[...]
        k = jnp.dot(xk, wk_ref[...], preferred_element_type=jnp.float32) + bk_ref[...]
        v = jnp.dot(xv, wv_ref[...], preferred_element_type=jnp.float32) + bv_ref[...]
        # Gate layers as block-diagonal full-width matmuls (all heads at once).
        gq = jnp.dot(q.astype(cdt), wgq_ref[...],
                     preferred_element_type=jnp.float32) + bgq_ref[...]
        gk = jnp.dot(k.astype(cdt), wgk_ref[...],
                     preferred_element_type=jnp.float32) + bgk_ref[...]
        g = (gq * gk).astype(cdt)
        mq = jax.nn.sigmoid(jnp.dot(g, wggq_ref[...],
                                    preferred_element_type=jnp.float32) + bggq_ref[...])
        mk = jax.nn.sigmoid(jnp.dot(g, wggk_ref[...],
                                    preferred_element_type=jnp.float32) + bggk_ref[...])
        qg_s[...] = (q * mq * scale).astype(cdt)         # 1/sqrt(d_k) folded here
        kg_s[...] = (k * mk).astype(cdt)
        v_s[...] = v.astype(cdt)

    # ---- every q tile: per-head attention + full-width output projection --
    qs = pl.multiple_of(qi * block_q, block_q)
    qg_t = qg_s[pl.ds(qs, block_q), :]                   # (block_q, d_model)

    ctx_heads = []
    for hh in range(h):
        lo = hh * d_k
        q_h = qg_t[:, lo:lo + d_k]                       # (block_q, d_k)
        k_h = kg_s[:, lo:lo + d_k]                       # (L, d_k)
        v_h = v_s[:, lo:lo + d_k]                        # (L, d_k)
        s = lax.dot_general(q_h, k_h, (((1,), (1,)), ((), ())),
                            preferred_element_type=jnp.float32)   # (block_q, L)
        s = s - jnp.max(s, axis=-1, keepdims=True)
        e = jnp.exp(s)
        p = e * pl.reciprocal(jnp.sum(e, axis=-1, keepdims=True), approx=True)
        ctx_heads.append(jnp.dot(p.astype(cdt), v_h,
                                 preferred_element_type=jnp.float32))
    ctx = jnp.concatenate(ctx_heads, axis=-1).astype(cdt)          # (block_q, d_model)
    out = jnp.dot(ctx, wo_ref[...], preferred_element_type=jnp.float32) + bo_ref[...]
    out_ref[0] = out.astype(out_ref.dtype)


def adaptive_self_gating_attention(xq, xk, xv, params, h, *,
                                   block_q=256, compute_dtype=jnp.bfloat16):
    B, L, d_model = xq.shape
    assert d_model % h == 0
    d_k = d_model // h
    out_dtype = xq.dtype
    cdt = compute_dtype
    f32 = jnp.float32

    # Query-tile size: must divide L and be sublane aligned; otherwise fall back.
    if not (block_q < L and L % block_q == 0 and block_q % 8 == 0):
        block_q = L
    n_q = L // block_q

    # ---- host-side weight prep (glue) -------------------------------------
    eye_h = jnp.eye(h, dtype=f32)

    def block_diag(w):  # (d_k, d_k) per-head weight -> (d_model, d_model) block-diag
        return jnp.kron(eye_h, w.astype(f32)).astype(cdt)

    wq = params["wq"].astype(cdt)
    wk = params["wk"].astype(cdt)
    wv = params["wv"].astype(cdt)
    wo = params["wo"].astype(cdt)
    wgq_bd = block_diag(params["wgq"])
    wgk_bd = block_diag(params["wgk"])
    wggq_bd = block_diag(params["wgg"][:, :d_k])      # q-half of gatefc_g
    wggk_bd = block_diag(params["wgg"][:, d_k:])      # k-half of gatefc_g

    def row(b):  # (d,) -> (1, d) f32 bias (kept f32 for f32 accumulation)
        return b.astype(f32).reshape(1, -1)

    bq, bk = row(params["bq"]), row(params["bk"])
    bv, bo = row(params["bv"]), row(params["bo"])
    bgq = row(jnp.tile(params["bgq"], h))
    bgk = row(jnp.tile(params["bgk"], h))
    bggq = row(jnp.tile(params["bgg"][:d_k], h))
    bggk = row(jnp.tile(params["bgg"][d_k:], h))

    # TODO(synk): when xq is xk is xv (true self-attention) the three activation
    # streams could be deduplicated into one input block (3x less HBM traffic).
    xq_c = xq.astype(cdt)
    xk_c = xk.astype(cdt)
    xv_c = xv.astype(cdt)

    act_spec = pl.BlockSpec((1, L, d_model), lambda b, i: (b, 0, 0))
    out_spec = pl.BlockSpec((1, block_q, d_model), lambda b, i: (b, i, 0))

    def full(a):
        return pl.BlockSpec(a.shape, lambda b, i: (0, 0))

    # Explicit scoped-VMEM budget (raise above the 16/32 MiB defaults when needed).
    csz = jnp.dtype(cdt).itemsize
    budget = (2 * 3 * L * d_model * csz                  # activation blocks (dbl-buffered)
              + 2 * 8 * d_model * d_model * csz          # weights
              + 2 * 8 * d_model * 4                      # biases
              + 3 * L * d_model * csz                    # persistent scratch
              + 2 * block_q * d_model * jnp.dtype(out_dtype).itemsize)
    vmem_limit = int(min(max(2 * budget, 16 << 20), 64 << 20))

    kernel = functools.partial(_asga_kernel, h=h, d_k=d_k, block_q=block_q)

    return pl.pallas_call(
        kernel,
        out_shape=jax.ShapeDtypeStruct((B, L, d_model), out_dtype),
        grid_spec=pltpu.PrefetchScalarGridSpec(
            num_scalar_prefetch=0,
            grid=(B, n_q),
            in_specs=[act_spec, act_spec, act_spec,
                      full(wq), full(wk), full(wv), full(wo),
                      full(wgq_bd), full(wgk_bd), full(wggq_bd), full(wggk_bd),
                      full(bq), full(bk), full(bv), full(bo),
                      full(bgq), full(bgk), full(bggq), full(bggk)],
            out_specs=out_spec,
            scratch_shapes=[pltpu.VMEM((L, d_model), cdt),   # gated Q (scaled)
                            pltpu.VMEM((L, d_model), cdt),   # gated K
                            pltpu.VMEM((L, d_model), cdt)]), # V
        compiler_params=pltpu.CompilerParams(
            # q-tile axis must stay "arbitrary": projections/gating are computed
            # once per batch (q_tile == 0) into persistent scratch.
            dimension_semantics=("parallel", "arbitrary"),
            vmem_limit_bytes=vmem_limit),
    )(xq_c, xk_c, xv_c,
      wq, wk, wv, wo,
      wgq_bd, wgk_bd, wggq_bd, wggk_bd,
      bq, bk, bv, bo,
      bgq, bgk, bggq, bggk)


def reference(xq, xk, xv, params, h):
    """Pure-JAX reference matching the PyTorch forward (eval mode, mask/group_prob None)."""
    B, L, d_model = xq.shape
    d_k = d_model // h

    def proj(x, w, b):
        y = x @ w + b
        return y.reshape(B, L, h, d_k).transpose(0, 2, 1, 3)   # (B, h, L, d_k)

    q = proj(xq, params["wq"], params["bq"])
    k = proj(xk, params["wk"], params["bk"])
    v = proj(xv, params["wv"], params["bv"])

    G = (q @ params["wgq"] + params["bgq"]) * (k @ params["wgk"] + params["bgk"])
    M = jax.nn.sigmoid(G @ params["wgg"] + params["bgg"])
    q = q * M[..., :d_k]
    k = k * M[..., d_k:]

    scores = jnp.einsum("bhqd,bhkd->bhqk", q, k) / math.sqrt(d_k)
    p = jax.nn.softmax(scores, axis=-1)
    ctx = jnp.einsum("bhqk,bhkd->bhqd", p, v)
    x = ctx.transpose(0, 2, 1, 3).reshape(B, L, h * d_k)
    return x @ params["wo"] + params["bo"]


def init_params(key, d_model, d_k):
    names_shapes = [
        ("wq", (d_model, d_model)), ("bq", (d_model,)),
        ("wk", (d_model, d_model)), ("bk", (d_model,)),
        ("wv", (d_model, d_model)), ("bv", (d_model,)),
        ("wo", (d_model, d_model)), ("bo", (d_model,)),
        ("wgq", (d_k, d_k)), ("bgq", (d_k,)),
        ("wgk", (d_k, d_k)), ("bgk", (d_k,)),
        ("wgg", (d_k, 2 * d_k)), ("bgg", (2 * d_k,)),
    ]
    keys = jax.random.split(key, len(names_shapes))
    params = {}
    for (name, shape), k in zip(names_shapes, keys):
        fan_in = shape[0]
        params[name] = (jax.random.normal(k, shape, jnp.float32)
                        / math.sqrt(float(fan_in)))
    return params


if __name__ == "__main__":
    B, L, d_model, h = 2, 16, 32, 4
    d_k = d_model // h

    root = jax.random.PRNGKey(0)
    kq, kk, kv, kp = jax.random.split(root, 4)
    xq = jax.random.normal(kq, (B, L, d_model), jnp.float32)
    xk = jax.random.normal(kk, (B, L, d_model), jnp.float32)
    xv = jax.random.normal(kv, (B, L, d_model), jnp.float32)
    params = init_params(kp, d_model, d_k)

    ref = reference(xq, xk, xv, params, h)

    # f32 compute path, 2 query tiles per batch (exercises scratch reuse across tiles).
    out_f32 = adaptive_self_gating_attention(xq, xk, xv, params, h,
                                             block_q=8, compute_dtype=jnp.float32)
    out_f32 = jax.block_until_ready(out_f32)
    assert out_f32.shape == (B, L, d_model)
    err_f32 = float(jnp.max(jnp.abs(out_f32 - ref)))
    assert err_f32 < 2e-2, f"f32 max abs err {err_f32}"

    # bf16 matmul path (f32 accumulation), same tiling.
    out_bf16 = adaptive_self_gating_attention(xq, xk, xv, params, h,
                                              block_q=8, compute_dtype=jnp.bfloat16)
    out_bf16 = jax.block_until_ready(out_bf16)
    assert out_bf16.shape == (B, L, d_model)
    err_bf16 = float(jnp.max(jnp.abs(out_bf16.astype(jnp.float32) - ref)))
    assert err_bf16 < 1e-1, f"bf16 max abs err {err_bf16}"

    print("KERNEL_OK")
</pallas_src>

<mosaic_0001>
module attributes {stable_mosaic.version = 11 : i64} {
  func.func @_asga_kernel(%arg0: i32, %arg1: i32, %arg2: memref<1x16x32xf32, #tpu.memory_space<vmem>>, %arg3: memref<1x16x32xf32, #tpu.memory_space<vmem>>, %arg4: memref<1x16x32xf32, #tpu.memory_space<vmem>>, %arg5: memref<32x32xf32, #tpu.memory_space<vmem>>, %arg6: memref<32x32xf32, #tpu.memory_space<vmem>>, %arg7: memref<32x32xf32, #tpu.memory_space<vmem>>, %arg8: memref<32x32xf32, #tpu.memory_space<vmem>>, %arg9: memref<32x32xf32, #tpu.memory_space<vmem>>, %arg10: memref<32x32xf32, #tpu.memory_space<vmem>>, %arg11: memref<32x32xf32, #tpu.memory_space<vmem>>, %arg12: memref<32x32xf32, #tpu.memory_space<vmem>>, %arg13: memref<1x32xf32, #tpu.memory_space<vmem>>, %arg14: memref<1x32xf32, #tpu.memory_space<vmem>>, %arg15: memref<1x32xf32, #tpu.memory_space<vmem>>, %arg16: memref<1x32xf32, #tpu.memory_space<vmem>>, %arg17: memref<1x32xf32, #tpu.memory_space<vmem>>, %arg18: memref<1x32xf32, #tpu.memory_space<vmem>>, %arg19: memref<1x32xf32, #tpu.memory_space<vmem>>, %arg20: memref<1x32xf32, #tpu.memory_space<vmem>>, %arg21: memref<1x8x32xf32, #tpu.memory_space<vmem>>, %arg22: memref<16x32xf32, #tpu.memory_space<vmem>>, %arg23: memref<16x32xf32, #tpu.memory_space<vmem>>, %arg24: memref<16x32xf32, #tpu.memory_space<vmem>>) attributes {dimension_semantics = [#tpu.dimension_semantics<parallel>, #tpu.dimension_semantics<arbitrary>], iteration_bounds = array<i64: 2, 2>, scalar_prefetch = 0 : i64, scratch_operands = 3 : i64, tpu.core_type = #tpu.core_type<tc>, window_params = [{transform_indices = @transform_0, window_bounds = array<i64: 1, 16, 32>}, {transform_indices = @transform_1, window_bounds = array<i64: 1, 16, 32>}, {transform_indices = @transform_2, window_bounds = array<i64: 1, 16, 32>}, {pipeline_mode = #tpu.pipeline_mode<synchronous>, transform_indices = @transform_3, window_bounds = array<i64: 32, 32>}, {pipeline_mode = #tpu.pipeline_mode<synchronous>, transform_indices = @transform_4, window_bounds = array<i64: 32, 32>}, {pipeline_mode = #tpu.pipeline_mode<synchronous>, transform_indices = @transform_5, window_bounds = array<i64: 32, 32>}, {pipeline_mode = #tpu.pipeline_mode<synchronous>, transform_indices = @transform_6, window_bounds = array<i64: 32, 32>}, {pipeline_mode = #tpu.pipeline_mode<synchronous>, transform_indices = @transform_7, window_bounds = array<i64: 32, 32>}, {pipeline_mode = #tpu.pipeline_mode<synchronous>, transform_indices = @transform_8, window_bounds = array<i64: 32, 32>}, {pipeline_mode = #tpu.pipeline_mode<synchronous>, transform_indices = @transform_9, window_bounds = array<i64: 32, 32>}, {pipeline_mode = #tpu.pipeline_mode<synchronous>, transform_indices = @transform_10, window_bounds = array<i64: 32, 32>}, {pipeline_mode = #tpu.pipeline_mode<synchronous>, transform_indices = @transform_11, window_bounds = array<i64: 1, 32>}, {pipeline_mode = #tpu.pipeline_mode<synchronous>, transform_indices = @transform_12, window_bounds = array<i64: 1, 32>}, {pipeline_mode = #tpu.pipeline_mode<synchronous>, transform_indices = @transform_13, window_bounds = array<i64: 1, 32>}, {pipeline_mode = #tpu.pipeline_mode<synchronous>, transform_indices = @transform_14, window_bounds = array<i64: 1, 32>}, {pipeline_mode = #tpu.pipeline_mode<synchronous>, transform_indices = @transform_15, window_bounds = array<i64: 1, 32>}, {pipeline_mode = #tpu.pipeline_mode<synchronous>, transform_indices = @transform_16, window_bounds = array<i64: 1, 32>}, {pipeline_mode = #tpu.pipeline_mode<synchronous>, transform_indices = @transform_17, window_bounds = array<i64: 1, 32>}, {pipeline_mode = #tpu.pipeline_mode<synchronous>, transform_indices = @transform_18, window_bounds = array<i64: 1, 32>}, {transform_indices = @transform_19, window_bounds = array<i64: 1, 8, 32>}]} {
    %c0_i32 = arith.constant 0 : i32
    %0 = arith.cmpi eq, %arg1, %c0_i32 : i32
    %1 = arith.extui %0 : i1 to i32
    %c0_i32_0 = arith.constant 0 : i32
    %2 = arith.cmpi ne, %1, %c0_i32_0 : i32
    scf.if %2 {
      %c0_37 = arith.constant 0 : index
      %c0_38 = arith.constant 0 : index
      %c0_39 = arith.constant 0 : index
      %76 = vector.load %arg2[%c0_37, %c0_38, %c0_39] : memref<1x16x32xf32, #tpu.memory_space<vmem>>, vector<1x16x32xf32>
      %77 = vector.shape_cast %76 : vector<1x16x32xf32> to vector<16x32xf32>
      %c0_40 = arith.constant 0 : index
      %c0_41 = arith.constant 0 : index
      %c0_42 = arith.constant 0 : index
      %78 = vector.load %arg3[%c0_40, %c0_41, %c0_42] : memref<1x16x32xf32, #tpu.memory_space<vmem>>, vector<1x16x32xf32>
      %79 = vector.shape_cast %78 : vector<1x16x32xf32> to vector<16x32xf32>
      %c0_43 = arith.constant 0 : index
      %c0_44 = arith.constant 0 : index
      %c0_45 = arith.constant 0 : index
      %80 = vector.load %arg4[%c0_43, %c0_44, %c0_45] : memref<1x16x32xf32, #tpu.memory_space<vmem>>, vector<1x16x32xf32>
      %81 = vector.shape_cast %80 : vector<1x16x32xf32> to vector<16x32xf32>
      %c0_46 = arith.constant 0 : index
      %c0_47 = arith.constant 0 : index
      %82 = vector.load %arg5[%c0_46, %c0_47] : memref<32x32xf32, #tpu.memory_space<vmem>>, vector<32x32xf32>
      %cst_48 = arith.constant dense<0.000000e+00> : vector<16x32xf32>
      %83 = tpu.matmul %77, %82, %cst_48 {dimension_numbers = #tpu.dot_dimension_numbers<[1], [0], [0], [1], [0, 0, 1, 1], [], []>} : vector<16x32xf32>, vector<32x32xf32>, vector<16x32xf32> -> vector<16x32xf32>
      %c0_49 = arith.constant 0 : index
      %c0_50 = arith.constant 0 : index
      %84 = vector.load %arg13[%c0_49, %c0_50] : memref<1x32xf32, #tpu.memory_space<vmem>>, vector<1x32xf32>
      %85 = vector.broadcast %84 : vector<1x32xf32> to vector<16x32xf32>
      %86 = arith.addf %83, %85 : vector<16x32xf32>
      %c0_51 = arith.constant 0 : index
      %c0_52 = arith.constant 0 : index
      %87 = vector.load %arg6[%c0_51, %c0_52] : memref<32x32xf32, #tpu.memory_space<vmem>>, vector<32x32xf32>
      %cst_53 = arith.constant dense<0.000000e+00> : vector<16x32xf32>
      %88 = tpu.matmul %79, %87, %cst_53 {dimension_numbers = #tpu.dot_dimension_numbers<[1], [0], [0], [1], [0, 0, 1, 1], [], []>} : vector<16x32xf32>, vector<32x32xf32>, vector<16x32xf32> -> vector<16x32xf32>
      %c0_54 = arith.constant 0 : index
      %c0_55 = arith.constant 0 : index
      %89 = vector.load %arg14[%c0_54, %c0_55] : memref<1x32xf32, #tpu.memory_space<vmem>>, vector<1x32xf32>
      %90 = vector.broadcast %89 : vector<1x32xf32> to vector<16x32xf32>
      %91 = arith.addf %88, %90 : vector<16x32xf32>
      %c0_56 = arith.constant 0 : index
      %c0_57 = arith.constant 0 : index
      %92 = vector.load %arg7[%c0_56, %c0_57] : memref<32x32xf32, #tpu.memory_space<vmem>>, vector<32x32xf32>
      %cst_58 = arith.constant dense<0.000000e+00> : vector<16x32xf32>
      %93 = tpu.matmul %81, %92, %cst_58 {dimension_numbers = #tpu.dot_dimension_numbers<[1], [0], [0], [1], [0, 0, 1, 1], [], []>} : vector<16x32xf32>, vector<32x32xf32>, vector<16x32xf32> -> vector<16x32xf32>
      %c0_59 = arith.constant 0 : index
      %c0_60 = arith.constant 0 : index
      %94 = vector.load %arg15[%c0_59, %c0_60] : memref<1x32xf32, #tpu.memory_space<vmem>>, vector<1x32xf32>
      %95 = vector.broadcast %94 : vector<1x32xf32> to vector<16x32xf32>
      %96 = arith.addf %93, %95 : vector<16x32xf32>
      %c0_61 = arith.constant 0 : index
      %c0_62 = arith.constant 0 : index
      %97 = vector.load %arg9[%c0_61, %c0_62] : memref<32x32xf32, #tpu.memory_space<vmem>>, vector<32x32xf32>
      %cst_63 = arith.constant dense<0.000000e+00> : vector<16x32xf32>
      %98 = tpu.matmul %86, %97, %cst_63 {dimension_numbers = #tpu.dot_dimension_numbers<[1], [0], [0], [1], [0, 0, 1, 1], [], []>} : vector<16x32xf32>, vector<32x32xf32>, vector<16x32xf32> -> vector<16x32xf32>
      %c0_64 = arith.constant 0 : index
      %c0_65 = arith.constant 0 : index
      %99 = vector.load %arg17[%c0_64, %c0_65] : memref<1x32xf32, #tpu.memory_space<vmem>>, vector<1x32xf32>
      %100 = vector.broadcast %99 : vector<1x32xf32> to vector<16x32xf32>
      %101 = arith.addf %98, %100 : vector<16x32xf32>
      %c0_66 = arith.constant 0 : index
      %c0_67 = arith.constant 0 : index
      %102 = vector.load %arg10[%c0_66, %c0_67] : memref<32x32xf32, #tpu.memory_space<vmem>>, vector<32x32xf32>
      %cst_68 = arith.constant dense<0.000000e+00> : vector<16x32xf32>
      %103 = tpu.matmul %91, %102, %cst_68 {dimension_numbers = #tpu.dot_dimension_numbers<[1], [0], [0], [1], [0, 0, 1, 1], [], []>} : vector<16x32xf32>, vector<32x32xf32>, vector<16x32xf32> -> vector<16x32xf32>
      %c0_69 = arith.constant 0 : index
      %c0_70 = arith.constant 0 : index
      %104 = vector.load %arg18[%c0_69, %c0_70] : memref<1x32xf32, #tpu.memory_space<vmem>>, vector<1x32xf32>
      %105 = vector.broadcast %104 : vector<1x32xf32> to vector<16x32xf32>
      %106 = arith.addf %103, %105 : vector<16x32xf32>
      %107 = arith.mulf %101, %106 : vector<16x32xf32>
      %c0_71 = arith.constant 0 : index
      %c0_72 = arith.constant 0 : index
      %108 = vector.load %arg11[%c0_71, %c0_72] : memref<32x32xf32, #tpu.memory_space<vmem>>, vector<32x32xf32>
      %cst_73 = arith.constant dense<0.000000e+00> : vector<16x32xf32>
      %109 = tpu.matmul %107, %108, %cst_73 {dimension_numbers = #tpu.dot_dimension_numbers<[1], [0], [0], [1], [0, 0, 1, 1], [], []>} : vector<16x32xf32>, vector<32x32xf32>, vector<16x32xf32> -> vector<16x32xf32>
      %c0_74 = arith.constant 0 : index
      %c0_75 = arith.constant 0 : index
      %110 = vector.load %arg19[%c0_74, %c0_75] : memref<1x32xf32, #tpu.memory_space<vmem>>, vector<1x32xf32>
      %111 = vector.broadcast %110 : vector<1x32xf32> to vector<16x32xf32>
      %112 = arith.addf %109, %111 : vector<16x32xf32>
      %113 = arith.negf %112 : vector<16x32xf32>
      %114 = math.exp %113 : vector<16x32xf32>
      %cst_76 = arith.constant 1.000000e+00 : f32
      %115 = vector.broadcast %cst_76 : f32 to vector<16x32xf32>
      %116 = arith.addf %115, %114 : vector<16x32xf32>
      %117 = arith.divf %115, %116 : vector<16x32xf32>
      %c0_77 = arith.constant 0 : index
      %c0_78 = arith.constant 0 : index
      %118 = vector.load %arg12[%c0_77, %c0_78] : memref<32x32xf32, #tpu.memory_space<vmem>>, vector<32x32xf32>
      %cst_79 = arith.constant dense<0.000000e+00> : vector<16x32xf32>
      %119 = tpu.matmul %107, %118, %cst_79 {dimension_numbers = #tpu.dot_dimension_numbers<[1], [0], [0], [1], [0, 0, 1, 1], [], []>} : vector<16x32xf32>, vector<32x32xf32>, vector<16x32xf32> -> vector<16x32xf32>
      %c0_80 = arith.constant 0 : index
      %c0_81 = arith.constant 0 : index
      %120 = vector.load %arg20[%c0_80, %c0_81] : memref<1x32xf32, #tpu.memory_space<vmem>>, vector<1x32xf32>
      %121 = vector.broadcast %120 : vector<1x32xf32> to vector<16x32xf32>
      %122 = arith.addf %119, %121 : vector<16x32xf32>
      %123 = arith.negf %122 : vector<16x32xf32>
      %124 = math.exp %123 : vector<16x32xf32>
      %cst_82 = arith.constant 1.000000e+00 : f32
      %125 = vector.broadcast %cst_82 : f32 to vector<16x32xf32>
      %126 = arith.addf %125, %124 : vector<16x32xf32>
      %127 = arith.divf %125, %126 : vector<16x32xf32>
      %128 = arith.mulf %86, %117 : vector<16x32xf32>
      %cst_83 = arith.constant 0.353553385 : f32
      %129 = vector.broadcast %cst_83 : f32 to vector<16x32xf32>
      %130 = arith.mulf %128, %129 : vector<16x32xf32>
      %c0_84 = arith.constant 0 : index
      %c0_85 = arith.constant 0 : index
      %131 = vector.load %arg22[%c0_84, %c0_85] : memref<16x32xf32, #tpu.memory_space<vmem>>, vector<16x32xf32>
      tpu.vector_store %arg22[%c0_84, %c0_85], %130 {strides = array<i32>} : memref<16x32xf32, #tpu.memory_space<vmem>>, vector<16x32xf32>,
      %132 = arith.mulf %91, %127 : vector<16x32xf32>
      %c0_86 = arith.constant 0 : index
      %c0_87 = arith.constant 0 : index
      %133 = vector.load %arg23[%c0_86, %c0_87] : memref<16x32xf32, #tpu.memory_space<vmem>>, vector<16x32xf32>
      tpu.vector_store %arg23[%c0_86, %c0_87], %132 {strides = array<i32>} : memref<16x32xf32, #tpu.memory_space<vmem>>, vector<16x32xf32>,
      %c0_88 = arith.constant 0 : index
      %c0_89 = arith.constant 0 : index
      %134 = vector.load %arg24[%c0_88, %c0_89] : memref<16x32xf32, #tpu.memory_space<vmem>>, vector<16x32xf32>
      tpu.vector_store %arg24[%c0_88, %c0_89], %96 {strides = array<i32>} : memref<16x32xf32, #tpu.memory_space<vmem>>, vector<16x32xf32>,
    } else {
    }
    %c8_i32 = arith.constant 8 : i32
    %3 = arith.muli %arg1, %c8_i32 : i32
    %4 = tpu.assume_multiple %3, 8 : i32
    %5 = arith.index_cast %4 : i32 to index
    %c0 = arith.constant 0 : index
    %6 = vector.load %arg22[%5, %c0] : memref<16x32xf32, #tpu.memory_space<vmem>>, vector<8x32xf32>
    %7 = vector.extract_strided_slice %6 {offsets = [0, 0], sizes = [8, 8], strides = [1, 1]} : vector<8x32xf32> to vector<8x8xf32>
    %c0_1 = arith.constant 0 : index
    %c0_2 = arith.constant 0 : index
    %8 = vector.load %arg23[%c0_1, %c0_2] : memref<16x32xf32, #tpu.memory_space<vmem>>, vector<16x8xf32>
    %c0_3 = arith.constant 0 : index
    %c0_4 = arith.constant 0 : index
    %9 = vector.load %arg24[%c0_3, %c0_4] : memref<16x32xf32, #tpu.memory_space<vmem>>, vector<16x8xf32>
    %cst = arith.constant dense<0.000000e+00> : vector<8x16xf32>
    %10 = tpu.matmul %7, %8, %cst {dimension_numbers = #tpu.dot_dimension_numbers<[1], [1], [0], [0], [0, 0, 1, 0], [], []>} : vector<8x8xf32>, vector<16x8xf32>, vector<8x16xf32> -> vector<8x16xf32>
    %cst_5 = arith.constant dense<0xFF800000> : vector<8xf32>
    %11 = vector.multi_reduction <maximumf>, %10, %cst_5 [1] : vector<8x16xf32> to vector<8xf32>
    %12 = vector.shape_cast %11 : vector<8xf32> to vector<8x1xf32>
    %13 = vector.broadcast %12 : vector<8x1xf32> to vector<8x16xf32>
    %14 = arith.subf %10, %13 : vector<8x16xf32>
    %15 = math.exp %14 : vector<8x16xf32>
    %cst_6 = arith.constant dense<0.000000e+00> : vector<8xf32>
    %16 = vector.multi_reduction <add>, %15, %cst_6 [1] : vector<8x16xf32> to vector<8xf32>
    %17 = vector.shape_cast %16 : vector<8xf32> to vector<8x1xf32>
    %18 = tpu.reciprocal %17 {approx = true} : vector<8x1xf32> -> vector<8x1xf32>
    %19 = vector.broadcast %18 : vector<8x1xf32> to vector<8x16xf32>
    %20 = arith.mulf %15, %19 : vector<8x16xf32>
    %cst_7 = arith.constant dense<0.000000e+00> : vector<8x8xf32>
    %21 = tpu.matmul %20, %9, %cst_7 {dimension_numbers = #tpu.dot_dimension_numbers<[1], [0], [0], [1], [0, 0, 1, 1], [], []>} : vector<8x16xf32>, vector<16x8xf32>, vector<8x8xf32> -> vector<8x8xf32>
    %22 = vector.extract_strided_slice %6 {offsets = [0, 8], sizes = [8, 8], strides = [1, 1]} : vector<8x32xf32> to vector<8x8xf32>
    %c0_8 = arith.constant 0 : index
    %c8 = arith.constant 8 : index
    %23 = vector.load %arg23[%c0_8, %c8] : memref<16x32xf32, #tpu.memory_space<vmem>>, vector<16x8xf32>
    %c0_9 = arith.constant 0 : index
    %c8_10 = arith.constant 8 : index
    %24 = vector.load %arg24[%c0_9, %c8_10] : memref<16x32xf32, #tpu.memory_space<vmem>>, vector<16x8xf32>
    %cst_11 = arith.constant dense<0.000000e+00> : vector<8x16xf32>
    %25 = tpu.matmul %22, %23, %cst_11 {dimension_numbers = #tpu.dot_dimension_numbers<[1], [1], [0], [0], [0, 0, 1, 0], [], []>} : vector<8x8xf32>, vector<16x8xf32>, vector<8x16xf32> -> vector<8x16xf32>
    %cst_12 = arith.constant dense<0xFF800000> : vector<8xf32>
    %26 = vector.multi_reduction <maximumf>, %25, %cst_12 [1] : vector<8x16xf32> to vector<8xf32>
    %27 = vector.shape_cast %26 : vector<8xf32> to vector<8x1xf32>
    %28 = vector.broadcast %27 : vector<8x1xf32> to vector<8x16xf32>
    %29 = arith.subf %25, %28 : vector<8x16xf32>
    %30 = math.exp %29 : vector<8x16xf32>
    %cst_13 = arith.constant dense<0.000000e+00> : vector<8xf32>
    %31 = vector.multi_reduction <add>, %30, %cst_13 [1] : vector<8x16xf32> to vector<8xf32>
    %32 = vector.shape_cast %31 : vector<8xf32> to vector<8x1xf32>
    %33 = tpu.reciprocal %32 {approx = true} : vector<8x1xf32> -> vector<8x1xf32>
    %34 = vector.broadcast %33 : vector<8x1xf32> to vector<8x16xf32>
    %35 = arith.mulf %30, %34 : vector<8x16xf32>
    %cst_14 = arith.constant dense<0.000000e+00> : vector<8x8xf32>
    %36 = tpu.matmul %35, %24, %cst_14 {dimension_numbers = #tpu.dot_dimension_numbers<[1], [0], [0], [1], [0, 0, 1, 1], [], []>} : vector<8x16xf32>, vector<16x8xf32>, vector<8x8xf32> -> vector<8x8xf32>
    %37 = vector.extract_strided_slice %6 {offsets = [0, 16], sizes = [8, 8], strides = [1, 1]} : vector<8x32xf32> to vector<8x8xf32>
    %c0_15 = arith.constant 0 : index
    %c16 = arith.constant 16 : index
    %38 = vector.load %arg23[%c0_15, %c16] : memref<16x32xf32, #tpu.memory_space<vmem>>, vector<16x8xf32>
    %c0_16 = arith.constant 0 : index
    %c16_17 = arith.constant 16 : index
    %39 = vector.load %arg24[%c0_16, %c16_17] : memref<16x32xf32, #tpu.memory_space<vmem>>, vector<16x8xf32>
    %cst_18 = arith.constant dense<0.000000e+00> : vector<8x16xf32>
    %40 = tpu.matmul %37, %38, %cst_18 {dimension_numbers = #tpu.dot_dimension_numbers<[1], [1], [0], [0], [0, 0, 1, 0], [], []>} : vector<8x8xf32>, vector<16x8xf32>, vector<8x16xf32> -> vector<8x16xf32>
    %cst_19 = arith.constant dense<0xFF800000> : vector<8xf32>
    %41 = vector.multi_reduction <maximumf>, %40, %cst_19 [1] : vector<8x16xf32> to vector<8xf32>
    %42 = vector.shape_cast %41 : vector<8xf32> to vector<8x1xf32>
    %43 = vector.broadcast %42 : vector<8x1xf32> to vector<8x16xf32>
    %44 = arith.subf %40, %43 : vector<8x16xf32>
    %45 = math.exp %44 : vector<8x16xf32>
    %cst_20 = arith.constant dense<0.000000e+00> : vector<8xf32>
    %46 = vector.multi_reduction <add>, %45, %cst_20 [1] : vector<8x16xf32> to vector<8xf32>
    %47 = vector.shape_cast %46 : vector<8xf32> to vector<8x1xf32>
    %48 = tpu.reciprocal %47 {approx = true} : vector<8x1xf32> -> vector<8x1xf32>
    %49 = vector.broadcast %48 : vector<8x1xf32> to vector<8x16xf32>
    %50 = arith.mulf %45, %49 : vector<8x16xf32>
    %cst_21 = arith.constant dense<0.000000e+00> : vector<8x8xf32>
    %51 = tpu.matmul %50, %39, %cst_21 {dimension_numbers = #tpu.dot_dimension_numbers<[1], [0], [0], [1], [0, 0, 1, 1], [], []>} : vector<8x16xf32>, vector<16x8xf32>, vector<8x8xf32> -> vector<8x8xf32>
    %52 = vector.extract_strided_slice %6 {offsets = [0, 24], sizes = [8, 8], strides = [1, 1]} : vector<8x32xf32> to vector<8x8xf32>
    %c0_22 = arith.constant 0 : index
    %c24 = arith.constant 24 : index
    %53 = vector.load %arg23[%c0_22, %c24] : memref<16x32xf32, #tpu.memory_space<vmem>>, vector<16x8xf32>
    %c0_23 = arith.constant 0 : index
    %c24_24 = arith.constant 24 : index
    %54 = vector.load %arg24[%c0_23, %c24_24] : memref<16x32xf32, #tpu.memory_space<vmem>>, vector<16x8xf32>
    %cst_25 = arith.constant dense<0.000000e+00> : vector<8x16xf32>
    %55 = tpu.matmul %52, %53, %cst_25 {dimension_numbers = #tpu.dot_dimension_numbers<[1], [1], [0], [0], [0, 0, 1, 0], [], []>} : vector<8x8xf32>, vector<16x8xf32>, vector<8x16xf32> -> vector<8x16xf32>
    %cst_26 = arith.constant dense<0xFF800000> : vector<8xf32>
    %56 = vector.multi_reduction <maximumf>, %55, %cst_26 [1] : vector<8x16xf32> to vector<8xf32>
    %57 = vector.shape_cast %56 : vector<8xf32> to vector<8x1xf32>
    %58 = vector.broadcast %57 : vector<8x1xf32> to vector<8x16xf32>
    %59 = arith.subf %55, %58 : vector<8x16xf32>
    %60 = math.exp %59 : vector<8x16xf32>
    %cst_27 = arith.constant dense<0.000000e+00> : vector<8xf32>
    %61 = vector.multi_reduction <add>, %60, %cst_27 [1] : vector<8x16xf32> to vector<8xf32>
    %62 = vector.shape_cast %61 : vector<8xf32> to vector<8x1xf32>
    %63 = tpu.reciprocal %62 {approx = true} : vector<8x1xf32> -> vector<8x1xf32>
    %64 = vector.broadcast %63 : vector<8x1xf32> to vector<8x16xf32>
    %65 = arith.mulf %60, %64 : vector<8x16xf32>
    %cst_28 = arith.constant dense<0.000000e+00> : vector<8x8xf32>
    %66 = tpu.matmul %65, %54, %cst_28 {dimension_numbers = #tpu.dot_dimension_numbers<[1], [0], [0], [1], [0, 0, 1, 1], [], []>} : vector<8x16xf32>, vector<16x8xf32>, vector<8x8xf32> -> vector<8x8xf32>
    %67 = tpu.concatenate %21, %36, %51, %66 in 1 : vector<8x8xf32>, vector<8x8xf32>, vector<8x8xf32>, vector<8x8xf32> -> vector<8x32xf32>
    %c0_29 = arith.constant 0 : index
    %c0_30 = arith.constant 0 : index
    %68 = vector.load %arg8[%c0_29, %c0_30] : memref<32x32xf32, #tpu.memory_space<vmem>>, vector<32x32xf32>
    %cst_31 = arith.constant dense<0.000000e+00> : vector<8x32xf32>
    %69 = tpu.matmul %67, %68, %cst_31 {dimension_numbers = #tpu.dot_dimension_numbers<[1], [0], [0], [1], [0, 0, 1, 1], [], []>} : vector<8x32xf32>, vector<32x32xf32>, vector<8x32xf32> -> vector<8x32xf32>
    %c0_32 = arith.constant 0 : index
    %c0_33 = arith.constant 0 : index
    %70 = vector.load %arg16[%c0_32, %c0_33] : memref<1x32xf32, #tpu.memory_space<vmem>>, vector<1x32xf32>
    %71 = vector.broadcast %70 : vector<1x32xf32> to vector<8x32xf32>
    %72 = arith.addf %69, %71 : vector<8x32xf32>
    %c0_34 = arith.constant 0 : index
    %c0_35 = arith.constant 0 : index
    %c0_36 = arith.constant 0 : index
    %73 = vector.load %arg21[%c0_34, %c0_35, %c0_36] : memref<1x8x32xf32, #tpu.memory_space<vmem>>, vector<1x8x32xf32>
    %74 = vector.shape_cast %73 : vector<1x8x32xf32> to vector<8x32xf32>
    %75 = vector.shape_cast %72 : vector<8x32xf32> to vector<1x8x32xf32>
    tpu.vector_store %arg21[%c0_34, %c0_35, %c0_36], %75 {strides = array<i32>} : memref<1x8x32xf32, #tpu.memory_space<vmem>>, vector<1x8x32xf32>,
    return
  }
  func.func @transform_0(%arg0: i32, %arg1: i32) -> (i32, i32, i32) {
    %c0_i32 = arith.constant 0 : i32
    %c0_i32_0 = arith.constant 0 : i32
    %c0_i32_1 = arith.constant 0 : i32
    return %arg0, %c0_i32, %c0_i32_0 : i32, i32, i32
  }
  func.func @transform_1(%arg0: i32, %arg1: i32) -> (i32, i32, i32) {
    %c0_i32 = arith.constant 0 : i32
    %c0_i32_0 = arith.constant 0 : i32
    %c0_i32_1 = arith.constant 0 : i32
    return %arg0, %c0_i32, %c0_i32_0 : i32, i32, i32
  }
  func.func @transform_2(%arg0: i32, %arg1: i32) -> (i32, i32, i32) {
    %c0_i32 = arith.constant 0 : i32
    %c0_i32_0 = arith.constant 0 : i32
    %c0_i32_1 = arith.constant 0 : i32
    return %arg0, %c0_i32, %c0_i32_0 : i32, i32, i32
  }
  func.func @transform_3(%arg0: i32, %arg1: i32) -> (i32, i32) {
    %c0_i32 = arith.constant 0 : i32
    %c0_i32_0 = arith.constant 0 : i32
    %c0_i32_1 = arith.constant 0 : i32
    return %c0_i32, %c0_i32_0 : i32, i32
  }
  func.func @transform_4(%arg0: i32, %arg1: i32) -> (i32, i32) {
    %c0_i32 = arith.constant 0 : i32
    %c0_i32_0 = arith.constant 0 : i32
    %c0_i32_1 = arith.constant 0 : i32
    return %c0_i32, %c0_i32_0 : i32, i32
  }
  func.func @transform_5(%arg0: i32, %arg1: i32) -> (i32, i32) {
    %c0_i32 = arith.constant 0 : i32
    %c0_i32_0 = arith.constant 0 : i32
    %c0_i32_1 = arith.constant 0 : i32
    return %c0_i32, %c0_i32_0 : i32, i32
  }
  func.func @transform_6(%arg0: i32, %arg1: i32) -> (i32, i32) {
    %c0_i32 = arith.constant 0 : i32
    %c0_i32_0 = arith.constant 0 : i32
    %c0_i32_1 = arith.constant 0 : i32
    return %c0_i32, %c0_i32_0 : i32, i32
  }
  func.func @transform_7(%arg0: i32, %arg1: i32) -> (i32, i32) {
    %c0_i32 = arith.constant 0 : i32
    %c0_i32_0 = arith.constant 0 : i32
    %c0_i32_1 = arith.constant 0 : i32
    return %c0_i32, %c0_i32_0 : i32, i32
  }
  func.func @transform_8(%arg0: i32, %arg1: i32) -> (i32, i32) {
    %c0_i32 = arith.constant 0 : i32
    %c0_i32_0 = arith.constant 0 : i32
    %c0_i32_1 = arith.constant 0 : i32
    return %c0_i32, %c0_i32_0 : i32, i32
  }
  func.func @transform_9(%arg0: i32, %arg1: i32) -> (i32, i32) {
    %c0_i32 = arith.constant 0 : i32
    %c0_i32_0 = arith.constant 0 : i32
    %c0_i32_1 = arith.constant 0 : i32
    return %c0_i32, %c0_i32_0 : i32, i32
  }
  func.func @transform_10(%arg0: i32, %arg1: i32) -> (i32, i32) {
    %c0_i32 = arith.constant 0 : i32
    %c0_i32_0 = arith.constant 0 : i32
    %c0_i32_1 = arith.constant 0 : i32
    return %c0_i32, %c0_i32_0 : i32, i32
  }
  func.func @transform_11(%arg0: i32, %arg1: i32) -> (i32, i32) {
    %c0_i32 = arith.constant 0 : i32
    %c0_i32_0 = arith.constant 0 : i32
    %c0_i32_1 = arith.constant 0 : i32
    return %c0_i32, %c0_i32_0 : i32, i32
  }
  func.func @transform_12(%arg0: i32, %arg1: i32) -> (i32, i32) {
    %c0_i32 = arith.constant 0 : i32
    %c0_i32_0 = arith.constant 0 : i32
    %c0_i32_1 = arith.constant 0 : i32
    return %c0_i32, %c0_i32_0 : i32, i32
  }
  func.func @transform_13(%arg0: i32, %arg1: i32) -> (i32, i32) {
    %c0_i32 = arith.constant 0 : i32
    %c0_i32_0 = arith.constant 0 : i32
    %c0_i32_1 = arith.constant 0 : i32
    return %c0_i32, %c0_i32_0 : i32, i32
  }
  func.func @transform_14(%arg0: i32, %arg1: i32) -> (i32, i32) {
    %c0_i32 = arith.constant 0 : i32
    %c0_i32_0 = arith.constant 0 : i32
    %c0_i32_1 = arith.constant 0 : i32
    return %c0_i32, %c0_i32_0 : i32, i32
  }
  func.func @transform_15(%arg0: i32, %arg1: i32) -> (i32, i32) {
    %c0_i32 = arith.constant 0 : i32
    %c0_i32_0 = arith.constant 0 : i32
    %c0_i32_1 = arith.constant 0 : i32
    return %c0_i32, %c0_i32_0 : i32, i32
  }
  func.func @transform_16(%arg0: i32, %arg1: i32) -> (i32, i32) {
    %c0_i32 = arith.constant 0 : i32
    %c0_i32_0 = arith.constant 0 : i32
    %c0_i32_1 = arith.constant 0 : i32
    return %c0_i32, %c0_i32_0 : i32, i32
  }
  func.func @transform_17(%arg0: i32, %arg1: i32) -> (i32, i32) {
    %c0_i32 = arith.constant 0 : i32
    %c0_i32_0 = arith.constant 0 : i32
    %c0_i32_1 = arith.constant 0 : i32
    return %c0_i32, %c0_i32_0 : i32, i32
  }
  func.func @transform_18(%arg0: i32, %arg1: i32) -> (i32, i32) {
    %c0_i32 = arith.constant 0 : i32
    %c0_i32_0 = arith.constant 0 : i32
    %c0_i32_1 = arith.constant 0 : i32
    return %c0_i32, %c0_i32_0 : i32, i32
  }
  func.func @transform_19(%arg0: i32, %arg1: i32) -> (i32, i32, i32) {
    %c0_i32 = arith.constant 0 : i32
    %c0_i32_0 = arith.constant 0 : i32
    return %arg0, %arg1, %c0_i32 : i32, i32, i32
  }
}

</mosaic_0001>

<bundles_post_ra>
// kernel: tpu_custom_call.1
= control target key start
LH: loop header
LB: loop body
LE: loop exit
PB: predicated region body
PF: predicated region fallthrough
CT: control target
= control target key end

     0   :  { %s3145_s0 = inlined_call_operand.hbm [shape: f32[2,16,32], index: 0, kind: input, shape index: {}]   ;;  %s3146_s1 = inlined_call_operand.hbm [shape: f32[2,16,32], index: 1, kind: input, shape index: {}]   ;;  %s3147_s2 = inlined_call_operand.hbm [shape: f32[2,16,32], index: 2, kind: input, shape index: {}]   ;;  %s3148_s3 = inlined_call_operand.hbm [shape: f32[32,32], index: 3, kind: input, shape index: {}]   ;;  %s3149_s4 = inlined_call_operand.hbm [shape: f32[32,32], index: 4, kind: input, shape index: {}]   ;;  %s3150_s5 = inlined_call_operand.hbm [shape: f32[32,32], index: 5, kind: input, shape index: {}]   ;;  %s3151_s6 = inlined_call_operand.hbm [shape: f32[32,32], index: 6, kind: input, shape index: {}]   ;;  %s3152_s7 = inlined_call_operand.hbm [shape: f32[32,32], index: 7, kind: input, shape index: {}]   ;;  %s3153_s8 = inlined_call_operand.hbm [shape: f32[32,32], index: 8, kind: input, shape index: {}]   ;;  %s3154_s9 = inlined_call_operand.hbm [shape: f32[32,32], index: 9, kind: input, shape index: {}]   ;;  %s3155_s10 = inlined_call_operand.hbm [shape: f32[32,32], index: 10, kind: input, shape index: {}]   ;;  %s3156_s11 = inlined_call_operand.vmem [shape: f32[1,32], index: 11, kind: input, shape index: {}]   ;;  %s3157_s12 = inlined_call_operand.vmem [shape: f32[1,32], index: 12, kind: input, shape index: {}]   ;;  %s3158_s13 = inlined_call_operand.vmem [shape: f32[1,32], index: 13, kind: input, shape index: {}]   ;;  %s3159_s14 = inlined_call_operand.vmem [shape: f32[1,32], index: 14, kind: input, shape index: {}]   ;;  %s3160_s15 = inlined_call_operand.vmem [shape: f32[1,32], index: 15, kind: input, shape index: {}]   ;;  %s3161_s16 = inlined_call_operand.vmem [shape: f32[1,32], index: 16, kind: input, shape index: {}]   ;;  %s3162_s17 = inlined_call_operand.vmem [shape: f32[1,32], index: 17, kind: input, shape index: {}]   ;;  %s3163_s18 = inlined_call_operand.vmem [shape: f32[1,32], index: 18, kind: input, shape index: {}]   ;;  %s3164_s19 = inlined_call_operand.hbm [shape: f32[2,16,32], index: 19, kind: output, shape index: {}]  }
   0x1   :  { %3178 = sst [smem:[#allocation41_spill]] %s3145_s0 }
   0x2   :  { %3179 = sst [smem:[#allocation42_spill]] %s3146_s1 }
   0x3   :  { %3180 = sst [smem:[#allocation43_spill]] %s3147_s2 }
   0x4   :  { %3181 = sst [smem:[#allocation44_spill]] %s3148_s3 }
   0x5   :  { %3182 = sst [smem:[#allocation45_spill]] %s3149_s4 }
   0x6   :  { %3183 = sst [smem:[#allocation46_spill]] %s3150_s5 }
   0x7   :  { %3184 = sst [smem:[#allocation47_spill]] %s3151_s6 }
   0x8   :  { %3185 = sst [smem:[#allocation48_spill]] %s3152_s7 }
   0x9   :  { %3186 = sst [smem:[#allocation49_spill]] %s3153_s8 }
   0xa   :  { %3187 = sst [smem:[#allocation50_spill]] %s3154_s9 }
   0xb   :  { %3188 = sst [smem:[#allocation51_spill]] %s3156_s11 }
   0xc   :  { %3189 = sst [smem:[#allocation52_spill]] %s3157_s12 }
   0xd   :  { %3190 = sst [smem:[#allocation53_spill]] %s3158_s13 }
   0xe   :  { %3191 = sst [smem:[#allocation54_spill]] %s3159_s14 }
   0xf   :  { %3192 = sst [smem:[#allocation55_spill]] %s3160_s15 }
  0x10   :  { %3193 = sst [smem:[#allocation56_spill]] %s3161_s16 }
  0x11   :  { %3194 = sst [smem:[#allocation57_spill]] %s3162_s17 }
  0x12   :  { %3195 = sst [smem:[#allocation58_spill]] %s3163_s18 }
  0x13   :  { %3196 = sst [smem:[#allocation59_spill]] %s3164_s19 }
  0x14   :  { %24 = vsyncpa [#allocation6], 0 }
  0x15   :  { %26 = vsyncpa [#allocation6 + $0x1], 0 }
  0x16   :  { %27 = vsyncpa [#allocation9], 0 }
  0x17   :  { %29 = vsyncpa [#allocation9 + $0x1], 0 }
  0x18   :  { %30 = vsyncpa [#allocation12], 0 }
  0x19   :  { %31 = vsyncpa [#allocation15], 0 }
  0x1a   :  { %32 = vsyncpa [#allocation18], 0 }
  0x1b   :  { %33 = vsyncpa [#allocation21], 0 }
  0x1c   :  { %34 = vsyncpa [#allocation7], 0 }
  0x1d   :  { %36 = vsyncpa [#allocation7 + $0x1], 0  ;;  %s2694_s0 = smov 0   ;;  %s2696_s30 = smov 0  }
  0x1e   :  { %s2698_s20 = smov 0   ;;  %s2700_s21 = smov 0  }
  0x1f   :  { %s2702_s1 = smov 0   ;;  %s2704_s22 = smov 0  }
  0x20   :  { %s2706_s2 = smov 0   ;;  %s2708_s23 = smov 0  }
  0x21   :  { %s2710_s24 = smov 0   ;;  %s2712_s25 = smov 0  }
  0x22   :  { %s2714_s3 = smov 0  }
  0x23 LB: > { %3197 = sst [smem:[#allocation31_spill]] %s2536_s0  ;;  %s2750_s26 = sadd.s32 4294967295, %s2576_s3   ;;  %s2576_s3 = sphi %s2714_s3, %s42_s3   ;;  %s2572_s25 = sphi %s2712_s25, %s3245_s25   ;;  %s2568_s24 = sphi %s2710_s24, %s3244_s24   ;;  %s2564_s23 = sphi %s2708_s23, %s3243_s23   ;;  %s2560_s2 = sphi %s2706_s2, %s3242_s2   ;;  %s2556_s22 = sphi %s2704_s22, %s3250_s22   ;;  %s2552_s1 = sphi %s2702_s1, %s3249_s1   ;;  %s2548_s21 = sphi %s2700_s21, %s3248_s21   ;;  %s2544_s20 = sphi %s2698_s20, %s3240_s20   ;;  %s2540_s30 = sphi %s2696_s30, %s3247_s30   ;;  %s2536_s0 = sphi %s2694_s0, %s3246_s0  }
  0x24   : > { %3198 = sst [smem:[#allocation32_spill]] %s2544_s20  ;;  %p1767_p0 = scmp.ge.s32.totalorder %s2576_s3, 1 }
  0x25   : > { %3199 = sst [smem:[#allocation33_spill]] %s2564_s23  ;;  %p75_p1 = scmp.eq.s32.totalorder %s2750_s26, 0 }
  0x26   : > { %3200 = sst [smem:[#allocation34_spill]] %s2568_s24  ;;  %p501_p2 = scmp.lt.s32.totalorder %s2576_s3, 5 }
  0x27   : > { %3201 = sst [smem:[#allocation35_spill]] %s2572_s25  ;;  %s2578_s23 = smov [#allocation11]  }
  0x28   : > { %s3202_s29 = sld [smem:[#allocation44_spill]]  ;;  %p2758_p3 = pnand %p1767_p0, %p501_p2 }
  0x29   : > { %s514_s18 = sshll.u32 %s2578_s23, 4  ;;  %s3205_s5 = sld [smem:[#allocation46_spill]]  ;;  %s515_s18 = int_to_ptr.vmem [resolvable:$true] %s514_s18 }
  0x2a   : > { %p1888_p4 = pneg %p2758_p3  ;;  %s3166_s28 = smov 128  }
  0x2b   : > { %s2581_s23 = smov [#allocation14]   ;;  %s3206_s7 = sld [smem:[#allocation48_spill]] }
  0x2c   : > { %p2766_p5 = pnand %p1888_p4, %p75_p1  ;;  %s542_s13 = sshll.u32 %s2581_s23, 4  ;;  %s543_s13 = int_to_ptr.vmem [resolvable:$true] %s542_s13 }
  0x2d   : > { %s3207_s9 = sld [smem:[#allocation50_spill]]  ;;  %s2582_s23 = smov [#allocation17]  }
  0x2e   : > { %s512_s14 = sshll.u32 %s3202_s29, 4  ;;  %s3168_s29 = smov 8   ;;  %s513_s14 = int_to_ptr.hbm [resolvable:$true] %s512_s14 }
  0x2f   : > { %s540_s27 = sshll.u32 %s3205_s5, 4  ;;  %s570_s11 = sshll.u32 %s2582_s23, 4  ;;  %s541_s27 = int_to_ptr.hbm [resolvable:$true] %s540_s27  ;;  %s571_s11 = int_to_ptr.vmem [resolvable:$true] %s570_s11 }
  0x30   : > { %1891 = dma.hbm_to_vmem [thread:$0]  (!%p2766_p5), %s513_s14, 512, %s515_s18, [#allocation12], %s3166_s28, %s3166_s28, %s3168_s29  }
  0x31   : > { %s568_s15 = sshll.u32 %s3206_s7, 4  ;;  %s2583_s12 = smov [#allocation20]   ;;  %s569_s15 = int_to_ptr.hbm [resolvable:$true] %s568_s15 }
  0x32   : > { %1897 = dma.hbm_to_vmem [thread:$0]  (!%p2766_p5), %s541_s27, 512, %s543_s13, [#allocation15], %s3166_s28, %s3166_s28, %s3168_s29  }
  0x33   : > { %s596_s18 = sshll.u32 %s3207_s9, 4  ;;  %s598_s13 = sshll.u32 %s2583_s12, 4  ;;  %s597_s18 = int_to_ptr.hbm [resolvable:$true] %s596_s18  ;;  %s599_s13 = int_to_ptr.vmem [resolvable:$true] %s598_s13 }
  0x34   : > { %1903 = dma.hbm_to_vmem [thread:$0]  (!%p2766_p5), %s569_s15, 512, %s571_s11, [#allocation18], %s3166_s28, %s3166_s28, %s3168_s29  }
  0x35   : > { %1909 = dma.hbm_to_vmem [thread:$0]  (!%p2766_p5), %s597_s18, 512, %s599_s13, [#allocation21], %s3166_s28, %s3166_s28, %s3168_s29  }
  0x36   : > { %s1766_s27 = sadd.s32 4294967294, %s2576_s3   ;;  %s51_s16 = sadd.s32 1, %s2568_s24 }
  0x37   : > { %p52_p6 = scmp.ge.s32.totalorder %s51_s16, 2  ;;  %s54_s14 = sadd.s32 1, %s2572_s25 }
  0x38   : > { %s61_s15 = sadd.s32 1, %s2556_s22  ;;  %p68_p7 = scmp.ne.s32.totalorder %s2556_s22, %s2552_s1 }
  0x39   : > { %s3252_s16 = smov (%p52_p6, %s51_s16), 0  ;;  %s3254_s14 = smov (!%p52_p6, %s54_s14), %s2572_s25 }
  0x3a   : > { %3208 = sst [smem:[#allocation36_spill]] %s3252_s16  ;;  %p69_p8 = scmp.eq.s32.totalorder %s2576_s3, 0 }
  0x3b   : > { %p74_p9 = scmp.ne.s32.totalorder %s2552_s1, %s2548_s21  ;;  %p56_p10 = scmp.ge.s32.totalorder %s3254_s14, 2 }
  0x3c   : > { %s473_s18 = ssub.s32 %s2568_s24, %s3252_s16  ;;  %p2813_p11 = por %p69_p8, %p68_p7 }
  0x3d   : > { %p2819_p12 = por %p75_p1, %p74_p9  ;;  %s3256_s14 = smov (%p56_p10, %s3254_s14), 0 }
  0x3e   : > { %3211 = sst [smem:[#allocation37_spill]] %s3256_s14  ;;  %s477_s21 = sadd.s32 1, %s2544_s20 }
  0x3f   : > { %p487_p13 = scmp.ne.s32.totalorder %s2544_s20, %s2540_s30  ;;  %s58_s12 = ssub.s32 %s2572_s25, %s3256_s14 }
  0x40   : > { %p488_p0 = scmp.eq.s32.totalorder %s2750_s26, 3  ;;  %p59_p2 = scmp.eq.s32.totalorder %s58_s12, 0 }
  0x41   : > { %s474_s13 = sor.u32 %s473_s18, %s58_s12  ;;  %p493_p7 = scmp.ne.s32.totalorder %s2540_s30, %s2536_s0 }
  0x42   : > { %p475_p4 = scmp.eq.s32.totalorder %s474_s13, 0  ;;  %p2831_p6 = por %p488_p0, %p487_p13 }
  0x43   : > { %s2836_s29 = scalar_select %p59_p2, %s2556_s22, %s61_s15  }
  0x44   : > { %s2839_s5 = scalar_select %p475_p4, %s2544_s20, %s477_s21  }
  0x45   : > { %3213 = sst [smem:[#allocation38_spill]] %s2836_s29  ;;  %p494_p8 = scmp.eq.s32.totalorder %s1766_s27, 3 }
  0x46   : > { %3214 = sst [smem:[#allocation39_spill]] %s2839_s5  ;;  %p1935_p9 = scmp.lt.s32.totalorder %s2576_s3, 4 }
  0x47   : > { %s3173_s7 = sand.u32 1, %s2556_s22   ;;  %p2845_p10 = por %p494_p8, %p493_p7 }
  0x48   : > { %s2851_s14 = sshll.u32 %s3173_s7, 4  ;;  %s2854_s18 = sshll.u32 %s2572_s25, 4 }
  0x49   : > { %s3215_s9 = scalar_select %p2845_p10, 1, 0 }
  0x4a   : > { %p2858_p13 = pnand %p1935_p9, %p2813_p11  ;;  %s672_s27 = sand.u32 1, %s2576_s3  }
  0x4b   : > { %3216 = sst [smem:[#allocation40_spill]] %s3215_s9  ;;  %s676_s24 = scalar_lea.vmem [#allocation8], %s2851_s14 }
  0x4c   : > { %s3218_s13 = sld [smem:[#allocation42_spill]]  ;;  %s684_s29 = sshll.u32 %s676_s24, 4  ;;  %s685_s29 = int_to_ptr.vmem [resolvable:$true] %s684_s29 }
  0x4d   : > { %s3219_s4 = sld [smem:[#allocation45_spill]]  ;;  %s2871_s20 = scalar_lea.sflag [#allocation9], %s672_s27 }
  0x4e   : > { %s3220_s9 = smov 8   ;;  %s3221_s0 = smov 128  }
  0x4f   : > { %s2584_s21 = smov [#allocation13]   ;;  %s3222_s6 = sld [smem:[#allocation47_spill]] }
  0x50   : > { %s528_s12 = sshll.u32 %s2584_s21, 4  ;;  %s3223_s8 = sld [smem:[#allocation49_spill]]  ;;  %s529_s12 = int_to_ptr.vmem [resolvable:$true] %s528_s12 }
  0x51   : > { %s2586_s21 = smov [#allocation19]   ;;  %s2587_s5 = smov [#allocation22]  }
  0x52   : > { %s681_s16 = scalar_lea.hbm %s3218_s13, %s2854_s18  ;;  %s584_s24 = sshll.u32 %s2586_s21, 4  ;;  %s585_s24 = int_to_ptr.vmem [resolvable:$true] %s584_s24 }
  0x53   : > { %s682_s7 = sshll.u32 %s681_s16, 4  ;;  %s526_s23 = sshll.u32 %s3219_s4, 4  ;;  %s683_s7 = int_to_ptr.hbm [resolvable:$true] %s682_s7  ;;  %s527_s23 = int_to_ptr.hbm [resolvable:$true] %s526_s23 }
  0x54   : > { %1919 = dma.hbm_to_vmem [thread:$0]  (!%p2858_p13), %s683_s7, 256, %s685_s29, %s2871_s20, %s3221_s0, %s3221_s0, %s3220_s9  }
  0x55   : > { %s554_s13 = sshll.u32 %s3222_s6, 4  ;;  %s2585_s29 = smov [#allocation16]   ;;  %s555_s13 = int_to_ptr.hbm [resolvable:$true] %s554_s13 }
  0x56   : > { %1894 = dma.hbm_to_vmem [thread:$0]  (!%p2766_p5), %s527_s23, 512, %s529_s12, [#allocation12], %s3221_s0, %s3221_s0, %s3220_s9  }
  0x57   : > { %s582_s7 = sshll.u32 %s3223_s8, 4  ;;  %s556_s27 = sshll.u32 %s2585_s29, 4  ;;  %s583_s7 = int_to_ptr.hbm [resolvable:$true] %s582_s7  ;;  %s557_s27 = int_to_ptr.vmem [resolvable:$true] %s556_s27 }
  0x58   : > { %1900 = dma.hbm_to_vmem [thread:$0]  (!%p2766_p5), %s555_s13, 512, %s557_s27, [#allocation15], %s3221_s0, %s3221_s0, %s3220_s9  }
  0x59   : > { %s610_s16 = sshll.u32 %s3155_s10, 4  ;;  %s612_s25 = sshll.u32 %s2587_s5, 4  ;;  %s611_s16 = int_to_ptr.hbm [resolvable:$true] %s610_s16  ;;  %s613_s25 = int_to_ptr.vmem [resolvable:$true] %s612_s25 }
  0x5a   : > { %1906 = dma.hbm_to_vmem [thread:$0]  (!%p2766_p5), %s583_s7, 512, %s585_s24, [#allocation18], %s3221_s0, %s3221_s0, %s3220_s9  }
  0x5b   : > { %s3224_s27 = sld [smem:[#allocation41_spill]]  ;;  %s654_s12 = scalar_lea.vmem [#allocation5], %s2851_s14 }
  0x5c   : > { %1912 = dma.hbm_to_vmem [thread:$0]  (!%p2766_p5), %s611_s16, 512, %s613_s25, [#allocation21], %s3221_s0, %s3221_s0, %s3220_s9  }
  0x5d   : > { %s662_s4 = sshll.u32 %s654_s12, 4  ;;  %s3225_s7 = sand.u32 1, %s2556_s22   ;;  %s663_s4 = int_to_ptr.vmem [resolvable:$true] %s662_s4 }
  0x5e   : > { %s651_s24 = scalar_lea.sflag [#allocation6], %s3225_s7  ;;  %s3226_s29 = sld [smem:[#allocation43_spill]] }
  0x5f   : > { %s698_s6 = scalar_lea.vmem [#allocation10], %s2851_s14 }
  0x60   : > { %s706_s8 = sshll.u32 %s698_s6, 4  ;;  %s707_s8 = int_to_ptr.vmem [resolvable:$true] %s706_s8 }
  0x61   : > { %s659_s21 = scalar_lea.hbm %s3224_s27, %s2854_s18 }
  0x62   : > { %s660_s23 = sshll.u32 %s659_s21, 4  ;;  %718 = sbr.rel (%p2758_p3) target bundleno = 1752 (0x6d8), region = 96  ;;  %s661_s23 = int_to_ptr.hbm [resolvable:$true] %s660_s23 }
  0x63   : > { %1916 = dma.hbm_to_vmem [thread:$0]  (!%p2858_p13), %s661_s23, 256, %s663_s4, %s651_s24, %s3221_s0, %s3221_s0, %s3220_s9  }
  0x64   : > { %s703_s17 = scalar_lea.hbm %s3226_s29, %s2854_s18  ;;  %s720_s4 = sand.u32 (!%p2758_p3), 1, %s2552_s1  }
  0x65   : > { %s704_s27 = sshll.u32 %s703_s17, 4  ;;  %s2934_s16 = sshll.u32 (!%p2758_p3), %s720_s4, 4  ;;  %s705_s27 = int_to_ptr.hbm [resolvable:$true] %s704_s27 }
  0x66   : > { %1922 = dma.hbm_to_vmem [thread:$0]  (!%p2858_p13), %s705_s27, 256, %s707_s8, %s2871_s20, %s3221_s0, %s3221_s0, %s3220_s9  }
  0x67   : > { %s721_s18 = scalar_lea.sflag [#allocation6], %s720_s4  ;;  %s724_s25 = scalar_lea.vmem [#allocation5], %s2934_s16 }
  0x68   : > { %2507 = dma.done.wait (%p2819_p12), %s721_s18, 256  }
  0x69   : > { %2509 = vsyncadd (%p2819_p12), %s721_s18, 4294967040  ;;  %s730_s6 = sand.u32 1, %s2750_s26   ;;  %s734_s9 = scalar_lea.vmem [#allocation8], %s2934_s16 }
  0x6a   : > { %s731_s8 = scalar_lea.sflag [#allocation9], %s730_s6 }
  0x6b   : > { %2511 = dma.done.wait (%p2819_p12), %s731_s8, 512  }
  0x6c   : > { %2513 = vsyncadd (%p2819_p12), %s731_s8, 4294966784  ;;  %s744_s19 = scalar_lea.vmem [#allocation10], %s2934_s16 }
  0x6d   : > { %2515 = dma.done.wait (%p75_p1), [#allocation12], 1024  }
  0x6e   : > { %2517 = vsyncadd (%p75_p1), [#allocation12], 4294966272 }
  0x6f   : > { %2519 = dma.done.wait (%p75_p1), [#allocation15], 1024  }
  0x70   : > { %2521 = vsyncadd (%p75_p1), [#allocation15], 4294966272 }
  0x71   : > { %2523 = dma.done.wait (%p75_p1), [#allocation18], 1024  }
  0x72   : > { %2525 = vsyncadd (%p75_p1), [#allocation18], 4294966272 }
  0x73   : > { %2527 = dma.done.wait (%p75_p1), [#allocation21], 1024  }
  0x74   : > { %2529 = vsyncadd (%p75_p1), [#allocation21], 4294966272  ;;  %s847_s0 = sand.u32 1, %s2540_s30   ;;  %p1799_p3 = scmp.ne.s32.totalorder %s2560_s2, 0 }
  0x75   : > { %s2967_s20 = sshll.u32 %s847_s0, 3  ;;  %s3227_s15 = sld [smem:[#allocation51_spill]] (!%p1799_p3) }
  0x76   : > { %s849_s14 = scalar_lea.vmem [#allocation23], %s2967_s20  ;;  %853 = sbr.rel (%p1799_p3) target bundleno = 568 (0x238), region = 144 }
  0x77   : > { %s3228_s12 = sld [smem:[#allocation52_spill]] (!%p1799_p3) }
  0x78   : > { %s3229_s5 = sld [smem:[#allocation53_spill]] (!%p1799_p3) }
  0x79   : > { %s3230_s17 = sld [smem:[#allocation56_spill]] (!%p1799_p3) }
  0x7a   : > { %s3231_s16 = sld [smem:[#allocation55_spill]] (!%p1799_p3) }
  0x7b   : > { %v863_v0 = vld [vmem:[#allocation11 + $0x18] sm:$0xff]  ;;  %v862_v1 = vld [vmem:[#allocation11 + $0x10] sm:$0xff]  ;;  %v861_v3 = vld [vmem:[#allocation11 + $0x8] sm:$0xff]  ;;  %vm868_vm0 = vcmask 261120   ;;  %s3232_s6 = sld [smem:[#allocation57_spill]] }
  0x7c   : > { %887 = vmatpush.msra.mxu0 %v863_v0  ;;  %1844 = vmatpush.msra.mxu3 %v863_v0  ;;  %v901_v2 = vld [vmem:[#allocation13 + $0x18] sm:$0xff]  ;;  %v900_v4 = vld [vmem:[#allocation13 + $0x10] sm:$0xff]  ;;  %v860_v5 = vld [vmem:[#allocation11] sm:$0xff] }
  0x7d   : > { %924 = vmatpush.msra.mxu1 %v901_v2  ;;  %v899_v6 = vld [vmem:[#allocation13 + $0x8] sm:$0xff]  ;;  %v854_v7 = vld [vmem:[%s724_s25] sm:$0xff]  ;;  %v975_v10 = vld [vmem:[#allocation17 + $0x18] sm:$0xff] }
  0x7e   : > { %888 = vmatpush.msra.mxu0 %v862_v1  ;;  %1845 = vmatpush.msra.mxu3 %v862_v1  ;;  %v855_v8 = vld [vmem:[%s724_s25 + $0x8] sm:$0xff]  ;;  %v898_v9 = vld [vmem:[#allocation13] sm:$0xff]  ;;  %v974_v12 = vld [vmem:[#allocation17 + $0x10] sm:$0xff] }
  0x7f   : > { %925 = vmatpush.msra.mxu1 %v900_v4  ;;  %v856_v11 = vld [vmem:[%s734_s9] sm:$0xff]  ;;  %v973_v13 = vld [vmem:[#allocation17 + $0x8] sm:$0xff]  ;;  %v1012_v16 = vld [vmem:[#allocation19 + $0x18] sm:$0xff] }
  0x80   : > { %889 = vmatpush.msra.mxu0 %v861_v3  ;;  %1846 = vmatpush.msra.mxu3 %v861_v3  ;;  %v857_v14 = vld [vmem:[%s734_s9 + $0x8] sm:$0xff]  ;;  %v972_v15 = vld [vmem:[#allocation17] sm:$0xff]  ;;  %v1011_v17 = vld [vmem:[#allocation19 + $0x10] sm:$0xff] }
  0x81   : > { %926 = vmatpush.msra.mxu1 %v899_v6  ;;  %v1010_v18 = vld [vmem:[#allocation19 + $0x8] sm:$0xff]  ;;  %v1009_v19 = vld [vmem:[#allocation19] sm:$0xff]  ;;  %v938_v20 = vld [vmem:[#allocation14 + $0x18] sm:$0xff] }
  0x82   : > { %890 = vmatpush.msra.mxu0 %v860_v5  ;;  %1847 = vmatpush.msra.mxu3 %v860_v5  ;;  %v937_v21 = vld [vmem:[#allocation14 + $0x10] sm:$0xff]  ;;  %v936_v22 = vld [vmem:[#allocation14 + $0x8] sm:$0xff]  ;;  %v1051_v23 = vld [vmem:[#allocation20 + $0x18] sm:$0xff] }
  0x83   : > { %1800 = vmatmul.msk.f32.vlgmr.msra.gmra.mxu0 %vm868_vm0, %v854_v7  ;;  %1801 = vmatmul.msk.f32.vlgmr.msra.gmra.mxu3 %vm868_vm0, %v855_v8  ;;  %v1050_v24 = vld [vmem:[#allocation20 + $0x10] sm:$0xff]  ;;  %v935_v25 = vld [vmem:[#allocation14] sm:$0xff]  ;;  %v1126_v27 = vld [vmem:[#allocation22 + $0x18] sm:$0xff] }
  0x84   : > { %927 = vmatpush.msra.mxu1 %v898_v9  ;;  %998 = vmatpush.msrb.mxu3 %v975_v10  ;;  %v858_v26 = vld [vmem:[%s744_s19] sm:$0xff]  ;;  %v1124_v29 = vld [vmem:[#allocation22 + $0x8] sm:$0xff] }
  0x85   : > { %1802 = vmatmul.msk.f32.vlgmr.msra.gmra.mxu1 %vm868_vm0, %v856_v11  ;;  %1035 = vmatpush.msrb.mxu0 %v1012_v16  ;;  %v1125_v28 = vld [vmem:[#allocation22 + $0x10] sm:$0xff]  ;;  %v859_v30 = vld [vmem:[%s744_s19 + $0x8] sm:$0xff]  ;;  %v1123_v42 = vld [vmem:[#allocation22] sm:$0xff]  ;;  %s3233_s19 = sld [smem:[#allocation58_spill]] }
  0x86   : > { %999 = vmatpush.msrb.mxu3 %v974_v12  ;;  %961 = vmatpush.msra.mxu2 %v938_v20  ;;  %v2049_v31 = vld [vmem:[%s3227_s15] ss:$0 sm:$0xff]  ;;  %v1049_v41 = vld [vmem:[#allocation20 + $0x8] sm:$0xff]  ;;  %v1048_v43 = vld [vmem:[#allocation20] sm:$0xff] }
  0x87   : > { %1036 = vmatpush.msrb.mxu0 %v1011_v17  ;;  %1074 = vmatpush.msrb.mxu1 %v1051_v23  ;;  %v2050_v32 = vld [vmem:[%s3228_s12] ss:$0 sm:$0xff] }
  0x88   : > { %1000 = vmatpush.msrb.mxu3 %v973_v13  ;;  %962 = vmatpush.msra.mxu2 %v937_v21  ;;  %v2053_v44 = vld [vmem:[%s3229_s5] ss:$0 sm:$0xff] }
  0x89   : > { %1037 = vmatpush.msrb.mxu0 %v1010_v18  ;;  %1075 = vmatpush.msrb.mxu1 %v1050_v24  ;;  %v2052_v48 = vld [vmem:[%s3230_s17] ss:$0 sm:$0xff] }
  0x8a   : > { %1001 = vmatpush.msrb.mxu3 %v972_v15  ;;  %963 = vmatpush.msra.mxu2 %v936_v22  ;;  %v2051_v51 = vld [vmem:[%s3231_s16] ss:$0 sm:$0xff] }
  0x8b   : > { %1038 = vmatpush.msrb.mxu0 %v1009_v19  ;;  %1076 = vmatpush.msrb.mxu1 %v1049_v41  ;;  %v2054_v61 = vld [vmem:[%s3232_s6] ss:$0 sm:$0xff] }
  0x8c   : > { %964 = vmatpush.msra.mxu2 %v935_v25  ;;  %v2055_v1 = vld [vmem:[%s3233_s19] ss:$0 sm:$0xff] }
  0x8d   : > { %1803 = vmatmul.msk.f32.gmra.mxu1 %vm868_vm0, %v857_v14  ;;  %1804 = vmatmul.msk.f32.vlgmr.msra.gmra.mxu2 %vm868_vm0, %v858_v26 }
  0x8e   : > { %1143 = vmatpush.msrb.mxu2 %v1126_v27  ;;  %1077 = vmatpush.msrb.mxu1 %v1048_v43 }
  0x90   : > { %1144 = vmatpush.msrb.mxu2 %v1125_v28 }
  0x92   : > { %1145 = vmatpush.msrb.mxu2 %v1124_v29 }
  0x94   : > { %1146 = vmatpush.msrb.mxu2 %v1123_v42 }
  0x95   : > { %1805 = vmatmul.msk.f32.gmra.mxu2 %vm868_vm0, %v859_v30 }
 0x100   : > { %v892_v33 = vpop.f32.mrf.mxu0 }
 0x101   : > { %v2995_v34 = vadd.f32 %v2049_v31, %v892_v33 }
 0x102   : > { %v929_v35 = vpop.f32.mrf.mxu1 }
 0x103   : > { %1806 = vmatmul.msk.f32.vlgmr.msrb.gmra.mxu3 %vm868_vm0, %v2995_v34  ;;  %v2999_v36 = vadd.f32 %v2050_v32, %v929_v35 }
 0x105   : > { %1808 = vmatmul.msk.f32.vlgmr.msrb.gmra.mxu0 %vm868_vm0, %v2999_v36 }
 0x106   : > { %v895_v37 = vpop.f32.mrf.mxu3 }
 0x107   : > { %v3003_v38 = vadd.f32 %v2049_v31, %v895_v37 }
 0x10a   : > { %v932_v39 = vpop.f32.mrf.mxu1 }
 0x10b   : > { %1807 = vmatmul.msk.f32.gmra.mxu3 %vm868_vm0, %v3003_v38  ;;  %v3007_v40 = vadd.f32 %v2050_v32, %v932_v39 }
 0x10d   : > { %1809 = vmatmul.msk.f32.gmra.mxu0 %vm868_vm0, %v3007_v40 }
 0x110   : > { %v966_v45 = vpop.f32.mrf.mxu2 }
 0x111   : > { %v967_v46 = vadd.f32 %v2053_v44, %v966_v45 }
 0x113   : > { %1202 = vst.msk [vmem:[#allocation4] sm:$0xff] %vm868_vm0, %v967_v46 }
 0x118   : > { %v969_v47 = vpop.f32.mrf.mxu2 }
 0x119   : > { %v970_v49 = vadd.f32 %v2053_v44, %v969_v47 }
 0x11b   : > { %1203 = vst.msk [vmem:[#allocation4 + $0x8] sm:$0xff] %vm868_vm0, %v970_v49 }
 0x182   : > { %v1040_v50 = vpop.f32.mrf.mxu0 }
 0x183   : > { %v1041_v52 = vadd.f32 %v2052_v48, %v1040_v50 }
 0x186   : > { %v1003_v53 = vpop.f32.mrf.mxu3 }
 0x187   : > { %v1004_v54 = vadd.f32 %v2051_v51, %v1003_v53 }
 0x189   : > { %v1046_v55 = vmul.f32 %v1041_v52, %v1004_v54 }
 0x18a   : > { %v1043_v56 = vpop.f32.mrf.mxu0 }
 0x18b   : > { %1810 = vmatmul.msk.f32.vlgmr.msrb.gmra.mxu1 %vm868_vm0, %v1046_v55  ;;  %1814 = vmatmul.msk.f32.vlgmr.msrb.gmra.mxu2 %vm868_vm0, %v1046_v55  ;;  %v1044_v57 = vadd.f32 %v2052_v48, %v1043_v56 }
 0x18e   : > { %v1006_v58 = vpop.f32.mrf.mxu3 }
 0x18f   : > { %v1007_v59 = vadd.f32 %v2051_v51, %v1006_v58 }
 0x191   : > { %v1047_v60 = vmul.f32 %v1044_v57, %v1007_v59 }
 0x193   : > { %1811 = vmatmul.msk.f32.gmra.mxu1 %vm868_vm0, %v1047_v60  ;;  %1815 = vmatmul.msk.f32.gmra.mxu2 %vm868_vm0, %v1047_v60 }
 0x208   : > { %v1079_v62 = vpop.f32.mrf.mxu1 }
 0x209   : > { %v1080_v63 = vadd.f32 %v2054_v61, %v1079_v62 }
 0x20b   : > { %v1812_v0 = vmul.f32 -1.442695, %v1080_v63 }
 0x20d   : > { %2056 = vpow2.f32 %v1812_v0 }
 0x20e   : > { %v1148_v2 = vpop.f32.mrf.mxu2 }
 0x20f   : > { %v1149_v3 = vadd.f32 %v2055_v1, %v1148_v2 }
 0x210   : > { %v1082_v4 = vpop.f32.mrf.mxu1 }
 0x211   : > { %v1816_v5 = vmul.f32 -1.442695, %v1149_v3  ;;  %v1083_v6 = vadd.f32 %v2054_v61, %v1082_v4 }
 0x213   : > { %v2057_v7 = vpop.eup %2056  ;;  %2058 = vpow2.f32 %v1816_v5  ;;  %v1813_v8 = vmul.f32 -1.442695, %v1083_v6 }
 0x214   : > { %v1091_v9 = vadd.f32 1.0, %v2057_v7 }
 0x215   : > { %2060 = vpow2.f32 %v1813_v8 }
 0x216   : > { %2062 = vrcp.f32 %v1091_v9  ;;  %v1151_v10 = vpop.f32.mrf.mxu2  ;;  %v1104_v20 = vand.u32 2147483648, %v1091_v9  ;;  %v1102_v23 = vand.u32 2147483647, %v1091_v9  ;;  %vm1098_vm2 = vweird.f32 %v1091_v9 }
 0x217   : > { %v1152_v11 = vadd.f32 %v2055_v1, %v1151_v10 }
 0x218   : > { %v1105_v28 = vor.u32 1.1754944e-38, %v1104_v20  ;;  %vm1103_vm4 = vcmp.eq.f32.partialorder %v1102_v23, 8.507059e+37 }
 0x219   : > { %v2059_v12 = vpop.eup %2058  ;;  %v1817_v13 = vmul.f32 -1.442695, %v1152_v11 }
 0x21a   : > { %v1160_v14 = vadd.f32 1.0, %v2059_v12 }
 0x21b   : > { %v2061_v15 = vpop.eup %2060  ;;  %2064 = vpow2.f32 %v1817_v13 }
 0x21c   : > { %v2063_v16 = vpop.eup %2062  ;;  %2066 = vrcp.f32 %v1160_v14  ;;  %v1092_v18 = vadd.f32 1.0, %v2061_v15  ;;  %v1173_v33 = vand.u32 2147483648, %v1160_v14  ;;  %v1171_v41 = vand.u32 2147483647, %v1160_v14 }
 0x21d   : > { %v1094_v17 = vmul.f32 %v2063_v16, %v1091_v9  ;;  %vm1099_vm1 = vweird.f32 %v2063_v16  ;;  %vm1167_vm6 = vweird.f32 %v1160_v14 }
 0x21e   : > { %2068 = vrcp.f32 %v1092_v18  ;;  %vm1100_vm3 = vmor %vm1098_vm2, %vm1099_vm1  ;;  %v1119_v45 = vand.u32 2147483648, %v1092_v18  ;;  %v1174_v47 = vor.u32 1.1754944e-38, %v1173_v33  ;;  %v1117_v49 = vand.u32 2147483647, %v1092_v18 }
 0x21f   : > { %v1095_v19 = vsub.f32 1.0, %v1094_v17  ;;  %vm1172_vm9 = vcmp.eq.f32.partialorder %v1171_v41, 8.507059e+37  ;;  %vm1113_vm10 = vweird.f32 %v1092_v18 }
 0x220   : > { %v1120_v54 = vor.u32 1.1754944e-38, %v1119_v45  ;;  %vm1118_vm12 = vcmp.eq.f32.partialorder %v1117_v49, 8.507059e+37 }
 0x221   : > { %v2065_v21 = vpop.eup %2064  ;;  %v1096_v22 = vmul.f32 %v2063_v16, %v1095_v19 }
 0x222   : > { %v2067_v24 = vpop.eup %2066  ;;  %v1161_v25 = vadd.f32 1.0, %v2065_v21 }
 0x223   : > { %v1097_v26 = vadd.f32 %v2063_v16, %v1096_v22  ;;  %v1163_v27 = vmul.f32 %v2067_v24, %v1160_v14  ;;  %vm1168_vm5 = vweird.f32 %v2067_v24 }
 0x224   : > { %2070 = vrcp.f32 %v1161_v25  ;;  %v2069_v29 = vpop.eup %2068  ;;  %vm1169_vm7 = vmor %vm1167_vm6, %vm1168_vm5  ;;  %v1188_v57 = vand.u32 2147483648, %v1161_v25  ;;  %v1186_v60 = vand.u32 2147483647, %v1161_v25  ;;  %vm1182_vm14 = vweird.f32 %v1161_v25 }
 0x225   : > { %v1101_v30 = vsel %vm1100_vm3, %v2063_v16, %v1097_v26  ;;  %v1164_v31 = vsub.f32 1.0, %v1163_v27  ;;  %v1109_v35 = vmul.f32 %v2069_v29, %v1092_v18  ;;  %vm1114_vm8 = vweird.f32 %v2069_v29 }
 0x226   : > { %v1106_v32 = vsel %vm1103_vm4, %v1105_v28, %v1101_v30  ;;  %vm1115_vm11 = vmor %vm1113_vm10, %vm1114_vm8  ;;  %v1189_v0 = vor.u32 1.1754944e-38, %v1188_v57  ;;  %vm1187_vm1 = vcmp.eq.f32.partialorder %v1186_v60, 8.507059e+37 }
 0x227   : > { %v1192_v37 = vmul.f32 %v1106_v32, %v2995_v34  ;;  %v1165_v39 = vmul.f32 %v2067_v24, %v1164_v31  ;;  %v1110_v42 = vsub.f32 1.0, %v1109_v35 }
 0x229   : > { %v1194_v43 = vmul.f32 0.35355338, %v1192_v37  ;;  %v1166_v44 = vadd.f32 %v2067_v24, %v1165_v39  ;;  %v1111_v48 = vmul.f32 %v2069_v29, %v1110_v42 }
 0x22a   : > { %v2071_v46 = vpop.eup %2070 }
 0x22b   : > { %1196 = vst.msk [vmem:[#allocation2] sm:$0xff] %vm868_vm0, %v1194_v43  ;;  %v1170_v50 = vsel %vm1169_vm7, %v2067_v24, %v1166_v44  ;;  %v1178_v51 = vmul.f32 %v2071_v46, %v1161_v25  ;;  %v1112_v52 = vadd.f32 %v2069_v29, %v1111_v48  ;;  %vm1183_vm13 = vweird.f32 %v2071_v46 }
 0x22c   : > { %v1175_v34 = vsel %vm1172_vm9, %v1174_v47, %v1170_v50  ;;  %vm1184_vm15 = vmor %vm1182_vm14, %vm1183_vm13 }
 0x22d   : > { %v1198_v53 = vmul.f32 %v1175_v34, %v2999_v36  ;;  %v1179_v55 = vsub.f32 1.0, %v1178_v51  ;;  %v1116_v56 = vsel %vm1115_vm11, %v2069_v29, %v1112_v52 }
 0x22e   : > { %v1121_v58 = vsel %vm1118_vm12, %v1120_v54, %v1116_v56 }
 0x22f   : > { %1200 = vst.msk [vmem:[#allocation3] sm:$0xff] %vm868_vm0, %v1198_v53  ;;  %v1180_v59 = vmul.f32 %v2071_v46, %v1179_v55  ;;  %v1193_v61 = vmul.f32 %v1121_v58, %v3003_v38 }
 0x231   : > { %v1181_v62 = vadd.f32 %v2071_v46, %v1180_v59  ;;  %v1195_v63 = vmul.f32 0.35355338, %v1193_v61 }
 0x233   : > { %v1185_v36 = vsel %vm1184_vm15, %v2071_v46, %v1181_v62  ;;  %1197 = vst.msk [vmem:[#allocation2 + $0x8] sm:$0xff] %vm868_vm0, %v1195_v63 }
 0x234   : > { %v1190_v1 = vsel %vm1187_vm1, %v1189_v0, %v1185_v36 }
 0x235   : > { %v1199_v2 = vmul.f32 %v1190_v1, %v3007_v40 }
 0x237   : > { %1201 = vst.msk [vmem:[#allocation3 + $0x8] sm:$0xff] %vm868_vm0, %v1199_v2 }
 0x238 PF: > { %vm1211_vm2 = vcmask 64512   ;;  %s1818_s26 = sshll.u32 %s2560_s2, 3  ;;  %v1207_v38 = vld [vmem:[#allocation3] sm:$0xff]  ;;  %s2588_s15 = smov 120   ;;  %vm1241_vm0 = vcmask 130048   ;;  %v1210_v16 = vld [vmem:[#allocation4 + $0x8] sm:$0xff] }
 0x239   : > { %s1205_s11 = scalar_lea.vmem [#allocation2], %s1818_s26  ;;  %1278 = vrot.lane.b32.xlu1 %v1207_v38, %s2588_s15  ;;  %s2589_s21 = smov 112   ;;  %v1209_v17 = vld [vmem:[#allocation4] sm:$0xff]  ;;  %1270 = vmatpush.msra.mxu1 %v1210_v16  ;;  %vm1508_vm3 = vcmask 195584   ;;  %vm1518_vm4 = vcmask 261120  }
 0x23a   : > { %v1206_v4 = vld [vmem:[%s1205_s11] sm:$0xff]  ;;  %s2590_s23 = smov 104   ;;  %v2072_v41 = vpack.i.bf16 %v1209_v17, %v1210_v16  ;;  %s2591_s12 = smov 8  }
 0x23b   : > { %1276 = vrot.lane.b32.xlu2 %v1206_v4, %s2588_s15  ;;  %1271 = vmatpush.msra.mxu1 %v1209_v17  ;;  %s2592_s7 = smov 16   ;;  %s2593_s24 = smov 24  }
 0x23c   : > { %s3234_s5 = sld [smem:[#allocation33_spill]]  ;;  %s1558_s9 = sshll.u32 %s849_s14, 4  ;;  %s1559_s9 = int_to_ptr.vmem [resolvable:$true] %s1558_s9 }
 0x23d   : > { %s3235_s16 = sld [smem:[#allocation59_spill]] }
 0x23e   : > { %v1208_v3 = vld [vmem:[#allocation3 + $0x8] sm:$0xff]  ;;  %s3236_s8 = sld [smem:[#allocation54_spill]] }
 0x23f   : > { %1819 = vmatpush.xpose.msk.msra.mxu0 %vm1211_vm2, %v1208_v3 }
 0x242   : > { %s1837_s13 = sshll.u32 %s3234_s5, 1 }
 0x243   : > { %1820 = vmatpush.xpose.msk.msra.mxu0 %vm1211_vm2, %v1207_v38  ;;  %1354 = vrot.lane.b32.xlu2 %v1208_v3, %s2589_s21  ;;  %s1554_s29 = sadd.s32 %s2560_s2, %s1837_s13  ;;  %s1544_s2 = scalar_lea.sflag [#allocation7], %s847_s0 }
 0x244   : > { %s1838_s17 = sshll.u32 %s1554_s29, 3 }
 0x245   : > { %s1556_s18 = scalar_lea.hbm %s3235_s16, %s1838_s17 }
 0x246   : > { %1821 = vmatmul.msk.f32.vlgmr.msra.gmra.mxu0 %vm1211_vm2, %v1206_v4  ;;  %s1560_s19 = sshll.u32 %s1556_s18, 4  ;;  %s1561_s19 = int_to_ptr.hbm [resolvable:$true] %s1560_s19 }
 0x247   : > { %s2448_s26 = sshra.s32 %s1561_s19, 4  ;;  %s2449_s26 = int_to_ptr.hbm [resolvable:$true] %s2448_s26 }
 0x248   : > { %s2450_s11 = scalar_lea.hbm %s2449_s26, 8  ;;  %p2455_p12 = scmp.lt.s32.totalorder %s2449_s26, %s3235_s16 }
 0x249   : > { %p2451_p1 = scmp.ne.s32.totalorder %s2449_s26, %s2450_s11 }
 0x24b   : > { %1426 = vrot.lane.b32.xlu2 %v1208_v3, %s2590_s23  ;;  %p2452_p5 = pnand %p2451_p1, %p2831_p6 }
 0x24d   : > { %p2453_p11 = pneg %p2452_p5 }
 0x253   : > { %1352 = vrot.lane.b32.xlu2 %v1207_v38, %s2589_s21 }
 0x25b   : > { %1350 = vrot.lane.b32.xlu2 %v1206_v4, %s2589_s21 }
 0x295   : > { %v1277_v13 = vpop.permute.xlu2 %1276 }
 0x29d   : > { %v1355_v14 = vpop.permute.xlu2 %1354 }
 0x29e   : > { %1827 = vmatpush.xpose.msk.msrb.mxu1 %vm1211_vm2, %v1355_v14 }
 0x2a5   : > { %v1427_v15 = vpop.permute.xlu2 %1426 }
 0x2a6   : > { %1831 = vmatpush.xpose.msk.msrb.mxu0 %vm1211_vm2, %v1427_v15  ;;  %v2087_v15 = vld [vmem:[%s3236_s8] ss:$0 sm:$0xff] }
 0x2ab   : > { %v1279_v12 = vpop.permute.xlu1 %1278 }
 0x2ad   : > { %v1353_v18 = vpop.permute.xlu2 %1352 }
 0x2ae   : > { %1828 = vmatpush.xpose.msk.msrb.mxu1 %vm1211_vm2, %v1353_v18 }
 0x2b5   : > { %v1351_v23 = vpop.permute.xlu2 %1350 }
 0x2c3   : > { %v1238_v40 = vpop.f32.mrf.mxu0 }
 0x2c4   : > { %v1242_v5 = vsel %vm1241_vm0, %v1238_v40, -inf }
 0x2c5   : > { %1243 = vmax.xlane.f32.xlu0 %v1242_v5  ;;  %v1513_v5 = vld [vmem:[#allocation16 + $0x18] sm:$0xff] }
 0x2d9   : > { %1280 = vrot.lane.b32.xlu0 %v1208_v3, %s2588_s15 }
 0x2e1   : > { %1424 = vrot.lane.b32.xlu0 %v1207_v38, %s2590_s23 }
 0x338   : > { %v1244_v6 = vpop.xlane.xlu0 %1243 }
 0x339   : > { %v1245_v7 = vsub.f32 %v1238_v40, %v1244_v6  ;;  %v1512_v6 = vld [vmem:[#allocation16 + $0x10] sm:$0xff] }
 0x33b   : > { %v1246_v8 = vmul.f32 1.442695, %v1245_v7  ;;  %v1511_v7 = vld [vmem:[#allocation16 + $0x8] sm:$0xff] }
 0x33d   : > { %2088 = vpow2.f32 %v1246_v8  ;;  %v1510_v8 = vld [vmem:[#allocation16] sm:$0xff] }
 0x343   : > { %v2089_v9 = vpop.eup %2088 }
 0x344   : > { %v1248_v10 = vsel %vm1241_vm0, %v2089_v9, 0.0 }
 0x345   : > { %1249 = vadd.xlane.f32.xlu1 %v1248_v10 }
 0x34b   : > { %v1281_v11 = vpop.permute.xlu0 %1280 }
 0x34c   : > { %1823 = vmatpush.xpose.msk.msra.mxu2 %vm1211_vm2, %v1281_v11 }
 0x350   : > { %1824 = vmatpush.xpose.msk.msra.mxu2 %vm1211_vm2, %v1279_v12 }
 0x353   : > { %1825 = vmatmul.msk.f32.vlgmr.msra.gmra.mxu2 %vm1211_vm2, %v1277_v13  ;;  %v1425_v19 = vpop.permute.xlu0 %1424 }
 0x354   : > { %1832 = vmatpush.xpose.msk.msrb.mxu0 %vm1211_vm2, %v1425_v19 }
 0x35e   : > { %1422 = vrot.lane.b32.xlu1 %v1206_v4, %s2590_s23 }
 0x3b8   : > { %v1250_v20 = vpop.xlane.xlu1 %1249 }
 0x3b9   : > { %2090 = vrcp.f32 %v1250_v20 }
 0x3bf   : > { %v2091_v21 = vpop.eup %2090 }
 0x3c0   : > { %v1252_v22 = vmul.f32 %v2091_v21, %v2089_v9 }
 0x3c2   : > { %1822 = vmatmul.msk.f32.vlgmr.msra.gmra.mxu1 %vm1241_vm0, %v1252_v22 }
 0x3c3   : > { %1534 = vmatpush.msra.mxu1 %v1513_v5 }
 0x3c5   : > { %1535 = vmatpush.msra.mxu1 %v1512_v6 }
 0x3c7   : > { %1536 = vmatpush.msra.mxu1 %v1511_v7 }
 0x3c9   : > { %1537 = vmatpush.msra.mxu1 %v1510_v8 }
 0x3ca   : > { %1829 = vmatmul.msk.f32.vlgmr.msrb.gmra.mxu1 %vm1211_vm2, %v1351_v23 }
 0x3d0   : > { %v1423_v24 = vpop.permute.xlu1 %1422 }
 0x3d1   : > { %1833 = vmatmul.msk.f32.vlgmr.msrb.gmra.mxu0 %vm1211_vm2, %v1423_v24 }
 0x3d6   : > { %v1305_v25 = vpop.f32.mrf.mxu2 }
 0x3d7   : > { %v1308_v26 = vsel %vm1241_vm0, %v1305_v25, -inf }
 0x3d8   : > { %1309 = vmax.xlane.f32.xlu0 %v1308_v26 }
 0x43f   : > { %v3066_v27 = vpop.f32.mrf.mxu1 }
 0x447   : > { %v1379_v28 = vpop.f32.mrf.mxu1 }
 0x448   : > { %v1382_v29 = vsel %vm1241_vm0, %v1379_v28, -inf }
 0x449   : > { %1383 = vmax.xlane.f32.xlu2 %v1382_v29 }
 0x44b   : > { %v1310_v30 = vpop.xlane.xlu0 %1309 }
 0x44c   : > { %v1311_v31 = vsub.f32 %v1305_v25, %v1310_v30 }
 0x44e   : > { %v1312_v32 = vmul.f32 1.442695, %v1311_v31  ;;  %v1451_v33 = vpop.f32.mrf.mxu0 }
 0x44f   : > { %v1454_v35 = vsel %vm1241_vm0, %v1451_v33, -inf }
 0x450   : > { %2092 = vpow2.f32 %v1312_v32  ;;  %1455 = vmax.xlane.f32.xlu1 %v1454_v35 }
 0x456   : > { %v2093_v37 = vpop.eup %2092 }
 0x457   : > { %v1314_v39 = vsel %vm1241_vm0, %v2093_v37, 0.0 }
 0x458   : > { %1315 = vadd.xlane.f32.xlu0 %v1314_v39 }
 0x461   : > { %2073 = vrot.lane.b32.xlu2 %v2072_v41, %s2588_s15 }
 0x4bc   : > { %v1384_v42 = vpop.xlane.xlu2 %1383 }
 0x4bd   : > { %v1385_v43 = vsub.f32 %v1379_v28, %v1384_v42 }
 0x4bf   : > { %v1386_v44 = vmul.f32 1.442695, %v1385_v43 }
 0x4c1   : > { %2094 = vpow2.f32 %v1386_v44 }
 0x4c3   : > { %v1456_v45 = vpop.xlane.xlu1 %1455 }
 0x4c4   : > { %v1457_v46 = vsub.f32 %v1451_v33, %v1456_v45  ;;  %v2074_v47 = vpop.permute.xlu2 %2073 }
 0x4c5   : > { %v2075_v48 = vunpack.i.l.bf16 %v2074_v47  ;;  %v2076_v49 = vunpack.i.h.bf16 %v2074_v47 }
 0x4c6   : > { %v1458_v50 = vmul.f32 1.442695, %v1457_v46 }
 0x4c7   : > { %v2095_v51 = vpop.eup %2094  ;;  %1344 = vmatpush.msra.mxu3 %v2075_v48 }
 0x4c8   : > { %2096 = vpow2.f32 %v1458_v50  ;;  %v1388_v34 = vsel %vm1241_vm0, %v2095_v51, 0.0 }
 0x4c9   : > { %1389 = vadd.xlane.f32.xlu1 %v1388_v34  ;;  %1345 = vmatpush.msra.mxu3 %v2076_v49 }
 0x4cb   : > { %v1316_v52 = vpop.xlane.xlu0 %1315 }
 0x4cc   : > { %2098 = vrcp.f32 %v1316_v52 }
 0x4ce   : > { %v2097_v53 = vpop.eup %2096 }
 0x4cf   : > { %v1460_v54 = vsel %vm1241_vm0, %v2097_v53, 0.0 }
 0x4d0   : > { %1461 = vadd.xlane.f32.xlu0 %v1460_v54 }
 0x4d2   : > { %v2099_v55 = vpop.eup %2098 }
 0x4d3   : > { %v1318_v56 = vmul.f32 %v2099_v55, %v2093_v37 }
 0x4d5   : > { %1826 = vmatmul.msk.f32.vlgmr.msra.gmra.mxu3 %vm1241_vm0, %v1318_v56 }
 0x4e2   : > { %2078 = vrot.lane.b32.xlu1 %v2072_v41, %s2589_s21 }
 0x4e4   : > { %2083 = vrot.lane.b32.xlu0 %v2072_v41, %s2590_s23  ;;  %s2454_s23 = scalar_lea.hbm %s3235_s16, 32 }
 0x4e5   : > { %p2456_p0 = scmp.lt.s32.totalorder %s2454_s23, %s2450_s11 }
 0x4e7   : > { %p2457_p2 = por %p2456_p0, %p2455_p12 }
 0x4e9   : > { %p2458_p4 = pnand %p2457_p2, %p2453_p11 }
 0x53c   : > { %v1390_v57 = vpop.xlane.xlu1 %1389 }
 0x53d   : > { %2100 = vrcp.f32 %v1390_v57 }
 0x543   : > { %v1462_v58 = vpop.xlane.xlu0 %1461  ;;  %v2101_v60 = vpop.eup %2100 }
 0x544   : > { %2102 = vrcp.f32 %v1462_v58  ;;  %v1392_v2 = vmul.f32 %v2101_v60, %v2095_v51 }
 0x54a   : > { %v2103_v36 = vpop.eup %2102 }
 0x54b   : > { %v1464_v38 = vmul.f32 %v2103_v36, %v2097_v53 }
 0x554   : > { %v2079_v59 = vpop.permute.xlu1 %2078 }
 0x555   : > { %v2081_v61 = vunpack.i.h.bf16 %v2079_v59  ;;  %v2080_v62 = vunpack.i.l.bf16 %v2079_v59 }
 0x556   : > { %v2084_v63 = vpop.permute.xlu0 %2083 }
 0x557   : > { %1416 = vmatpush.msrb.mxu3 %v2080_v62  ;;  %v2085_v0 = vunpack.i.l.bf16 %v2084_v63  ;;  %v2086_v3 = vunpack.i.h.bf16 %v2084_v63 }
 0x558   : > { %v1347_v1 = vpop.f32.mrf.mxu3 }
 0x559   : > { %1417 = vmatpush.msrb.mxu3 %v2081_v61  ;;  %1495 = vrot.lane.b32.xlu2 %v1347_v1, %s2591_s12 }
 0x55a   : > { %1488 = vmatpush.msrb.mxu2 %v2085_v0  ;;  %1830 = vmatmul.msk.f32.vlgmr.msrb.gmra.mxu3 %vm1241_vm0, %v1392_v2 }
 0x55c   : > { %1489 = vmatpush.msrb.mxu2 %v2086_v3 }
 0x55d   : > { %1834 = vmatmul.msk.f32.vlgmr.msrb.gmra.mxu2 %vm1241_vm0, %v1464_v38 }
 0x5b3   : > { %v1496_v9 = vpop.permute.xlu2 %1495 }
 0x5b4   : > { %v1506_v11 = vsel %vm1211_vm2, %v3066_v27, %v1496_v9 }
 0x5dd   : > { %v1419_v4 = vpop.f32.mrf.mxu3 }
 0x5de   : > { %1499 = vrot.lane.b32.xlu2 %v1419_v4, %s2592_s7 }
 0x5e0   : > { %v1491_v40 = vpop.f32.mrf.mxu2 }
 0x5e1   : > { %1503 = vrot.lane.b32.xlu0 %v1491_v40, %s2593_s24 }
 0x638   : > { %v1500_v10 = vpop.permute.xlu2 %1499 }
 0x639   : > { %v1507_v12 = vsel %vm1241_vm0, %v1506_v11, %v1500_v10 }
 0x653   : > { %v1504_v13 = vpop.permute.xlu0 %1503 }
 0x654   : > { %v1509_v14 = vsel %vm1508_vm3, %v1507_v12, %v1504_v13 }
 0x655   : > { %1835 = vmatmul.msk.f32.vlgmr.msra.gmra.mxu1 %vm1518_vm4, %v1509_v14 }
 0x6d2   : > { %v1539_v16 = vpop.f32.mrf.mxu1 }
 0x6d3   : > { %v1540_v17 = vadd.f32 %v2087_v15, %v1539_v16 }
 0x6d5   : > { %1542 = vst.msk [vmem:[%s849_s14] sm:$0xff] %vm1518_vm4, %v1540_v17 }
 0x6d6   : > { %2461 = shalt.err (!%p2458_p4)
}
 0x6d7   : > { %1886 = dma.vmem_to_hbm [thread:$0]  (%p2831_p6), %s1559_s9, 128, %s1561_s19, %s1544_s2  }
 0x6d8 PF: > { %s3237_s0 = sld [smem:[#allocation31_spill]]  ;;  %p1944_p7 = scmp.ge.s32.totalorder %s2576_s3, 2 }
 0x6da   : > { %p1924_p8 = pnand %p1944_p7, %p2845_p10 }
 0x6dc   : > { %p1925_p9 = pneg %p1924_p8 }
 0x6de   : > { %s1572_s14 = sand.u32 1, %s3237_s0  }
 0x6df   : > { %s1573_s24 = scalar_lea.sflag [#allocation7], %s1572_s14 }
 0x6e0   : > { %2531 = dma.done.wait (%p1925_p9), %s1573_s24, 128  }
 0x6e1   : > { %2533 = vsyncadd (%p1925_p9), %s1573_s24, 4294967168  ;;  %s42_s3 = sadd.s32 1, %s2576_s3   ;;  %s3239_s5 = sld [smem:[#allocation32_spill]] }
 0x6e2   : > { %p39_p13 = scmp.ge.s32.totalorder %s42_s3, 6   ;;  %s3240_s20 = sld [smem:[#allocation39_spill]] }
 0x6e3   : > { %s3241_s28 = sld [smem:[#allocation38_spill]]  ;;  %s3246_s0 = smov %s2540_s30 }
 0x6e4   : > { %s3242_s2 = sld [smem:[#allocation34_spill]]  ;;  %s3248_s21 = smov %s2552_s1 }
 0x6e5   : > { %s3243_s23 = sld [smem:[#allocation35_spill]]  ;;  %s3249_s1 = smov %s2556_s22 }
 0x6e6   : > { %s3244_s24 = sld [smem:[#allocation36_spill]]  ;;  %41 = sbr.rel (!%p39_p13) target bundleno = 35 (0x23), region = 202 }
 0x6e7   : > { %s3245_s25 = sld [smem:[#allocation37_spill]]  ;;  %s3247_s30 = smov %s3239_s5 }
 0x6e9   : > { %s3250_s22 = smov %s3241_s28 }
 0x6eb   :  { %1579 = vsyncpa [#allocation6], 1 }
 0x6ec   :  { %1581 = vsyncpa [#allocation6 + $0x1], 1 }
 0x6ed   :  { %1582 = vsyncpa [#allocation9], 1 }
 0x6ee   :  { %1584 = vsyncpa [#allocation9 + $0x1], 1 }
 0x6ef   :  { %1585 = vsyncpa [#allocation12], 1 }
 0x6f0   :  { %1586 = vsyncpa [#allocation15], 1 }
 0x6f1   :  { %1587 = vsyncpa [#allocation18], 1 }
 0x6f2   :  { %1588 = vsyncpa [#allocation21], 1 }
 0x6f3   :  { %1589 = vsyncpa [#allocation7], 1 }
 0x6f4   :  { %1591 = vsyncpa [#allocation7 + $0x1], 1 }

</bundles_post_ra>
